<compile_context>
chip_gen: v5e
topology: v5e:2x2
jax: 0.10.0
libtpu: 0.0.40
codegen_flags: <defaults>
</compile_context>

<pallas_src>
import jax
import jax.numpy as jnp
import numpy as np
from jax.experimental import pallas as pl
from jax.experimental.pallas import tpu as pltpu

# ---------------- module hyper-params ----------------
FEAT_DIM = 32
MAX_AA_TYPES = 22
MAX_NUM_ATOMS = 15                         # unused in forward (parity with __init__)
NUM_FUNCS = 3                              # AngularEncoding default
NUM_DIHED = 6                              # phi, psi, chi0..chi3
NUM_FREQS = 2 * NUM_FUNCS                  # 6 original bands (1.0 appears twice)
ANG_DIM = 1 + 2 * NUM_FREQS                # 13 features per angle
IN_FEAT = FEAT_DIM + NUM_DIHED * ANG_DIM   # 110
HIDDEN = FEAT_DIM * 2                      # 64

# original freq bands (reference): [1, 2, 3, 1, 1/2, 1/3]
FREQ_BANDS = [float(i + 1) for i in range(NUM_FUNCS)] + \
             [1.0 / float(i + 1) for i in range(NUM_FUNCS)]
# deduplicated bands used by the kernel
UNIQUE_FREQS = [1.0, 2.0, 3.0, 1.0 / 2.0, 1.0 / 3.0]
NUM_UNIQ = len(UNIQUE_FREQS)               # 5
SLOTS = 2 * NUM_UNIQ                       # 10 (5 sin + 5 cos) per angle
TRIG_PER_RES = NUM_DIHED * SLOTS           # 60

# ---- packed slab layout: 4 residues per sublane row, grouped by feature type ----
NUM_PACK = 4
Z_W = NUM_PACK * TRIG_PER_RES              # 240  trig arguments (precomputed, f32)
OH_W = NUM_PACK * MAX_AA_TYPES             # 88   amino-acid one-hot
XM_W = NUM_PACK * NUM_DIHED                # 24   dihedral * dihedral_mask
DM_W = NUM_PACK * NUM_DIHED                # 24   dihedral_mask
RM_W = NUM_PACK                            # 4    residue mask
PACK_W = 384                               # 380 used + 4 zero pad (3 full vregs)
PAD_W = PACK_W - (Z_W + OH_W + XM_W + DM_W + RM_W)
DM_OFF = Z_W + OH_W + XM_W                 # 352
RM_OFF = DM_OFF + DM_W                     # 376

H1_W = NUM_PACK * HIDDEN                   # 256
OUT_W = NUM_PACK * FEAT_DIM                # 128  (full vreg -> unmasked stores)
SEL_W = OUT_W + Z_W                        # 368  [resm replicated | dihed-mask replicated]

TG_MAX = 1024                              # row tile (4096 residues); ~5.5 MiB VMEM total


# ---------------- Pallas kernel ----------------
def per_residue_encoder_kernel(packed_ref, w1_ref, wsc_ref, sel_ref,
                               w2_ref, w3_ref, w4_ref, bias_ref, out_ref):
    packed = packed_ref[...]                                     # (TG, 384)

    # Trig features: arguments were precomputed exactly (f32) on the wrapper side,
    # cos is encoded as sin(z + pi/2).  Lane-0-aligned slice, lane-dense sin.
    trig = jnp.sin(packed[:, :Z_W])                              # (TG, 240)

    # Replicate residue mask (-> 32 lanes/residue) and dihedral masks (-> 10
    # lanes/angle) with one exact 0/1 selection matmul over the full slab.
    sel = jnp.dot(packed, sel_ref[...], preferred_element_type=jnp.float32)  # (TG, 368)
    resm = sel[:, :OUT_W]                                        # (TG, 128), vreg 0
    mrep = sel[:, OUT_W:]                                        # (TG, 240), vregs 1..2
    trig = trig * mrep

    # Layer 1: one fused matmul over the full slab (one-hot + raw-angle rows;
    # b1 folded into the one-hot path) plus the trig-block matmul.
    h = jnp.dot(packed, w1_ref[...], preferred_element_type=jnp.float32)     # (TG, 256)
    h = h + jnp.dot(trig, wsc_ref[...], preferred_element_type=jnp.float32)
    h = jnp.maximum(h, 0.0)

    # Layers 2..4 with block-diagonal (I4 (x) W) weights and replicated biases.
    h = jnp.maximum(jnp.dot(h, w2_ref[...], preferred_element_type=jnp.float32)
                    + bias_ref[0:1, :], 0.0)                     # (TG, 128)
    h = jnp.maximum(jnp.dot(h, w3_ref[...], preferred_element_type=jnp.float32)
                    + bias_ref[1:2, :], 0.0)
    h = jnp.dot(h, w4_ref[...], preferred_element_type=jnp.float32) + bias_ref[2:3, :]

    out_ref[...] = h * resm                                      # unmasked 128-lane store


# ---------------- wrapper-side parameter fusion ----------------
def _derived_weights(params):
    """Pre-fuse / permute / block-diagonalize parameters for the packed layout."""
    hp = jax.lax.Precision.HIGHEST
    f32 = jnp.float32
    embed, w1, b1 = params["embed"], params["w1"], params["b1"]

    # layer-1 sub-blocks in the kernel's feature order
    wab = jnp.dot(embed, w1[:FEAT_DIM], precision=hp) + b1          # (22, 64), b1 folded
    raw_idx = np.array([FEAT_DIM + j * ANG_DIM for j in range(NUM_DIHED)])
    wraw = w1[raw_idx]                                              # (6, 64)

    sin_idx = np.array([FEAT_DIM + j * ANG_DIM + 1 + k
                        for j in range(NUM_DIHED) for k in range(NUM_FREQS)])
    cos_idx = np.array([FEAT_DIM + j * ANG_DIM + 1 + NUM_FREQS + k
                        for j in range(NUM_DIHED) for k in range(NUM_FREQS)])
    sin6 = w1[sin_idx].reshape(NUM_DIHED, NUM_FREQS, HIDDEN)
    cos6 = w1[cos_idx].reshape(NUM_DIHED, NUM_FREQS, HIDDEN)

    # dedup the duplicated 1.0 band (orig k=0 and k=3): fold their W1 rows (exact)
    def dedup(x):   # (6, 6, H) -> (6, 5, H) in UNIQUE_FREQS order [1, 2, 3, 1/2, 1/3]
        return jnp.concatenate([x[:, 0:1] + x[:, 3:4], x[:, 1:3], x[:, 4:6]], axis=1)
    wsc60 = jnp.concatenate([dedup(sin6), dedup(cos6)], axis=1)     # (6, 10, 64)
    wsc60 = wsc60.reshape(TRIG_PER_RES, HIDDEN)                     # (60, 64)

    eye4 = jnp.eye(NUM_PACK, dtype=f32)
    kron = lambda w: jnp.kron(eye4, w.astype(f32))                  # block-diagonal

    # fused layer-1 weight over the FULL slab (zero rows for trig/mask/resm lanes)
    w1_bd = jnp.concatenate([
        jnp.zeros((Z_W, H1_W), f32),
        kron(wab),                                                  # (88, 256)
        kron(wraw),                                                 # (24, 256)
        jnp.zeros((DM_W + RM_W + PAD_W, H1_W), f32),
    ], axis=0)                                                      # (384, 256)
    wsc_bd = kron(wsc60)                                            # (240, 256)

    # exact 0/1 selection matrix: slab -> [resm x32 lanes/res | dihed-mask x10 lanes/angle]
    sel = np.zeros((PACK_W, SEL_W), np.float32)
    for r in range(NUM_PACK):
        sel[RM_OFF + r, r * FEAT_DIM:(r + 1) * FEAT_DIM] = 1.0
        for j in range(NUM_DIHED):
            c0 = OUT_W + r * TRIG_PER_RES + j * SLOTS
            sel[DM_OFF + r * NUM_DIHED + j, c0:c0 + SLOTS] = 1.0
    sel_bd = jnp.asarray(sel)

    w2_bd = kron(params["w2"])                                      # (256, 128)
    w3_bd = kron(params["w3"])                                      # (128, 128)
    w4_bd = kron(params["w4"])                                      # (128, 128)
    bias = jnp.concatenate([jnp.tile(params["b2"], (1, NUM_PACK)),
                            jnp.tile(params["b3"], (1, NUM_PACK)),
                            jnp.tile(params["b4"], (1, NUM_PACK))], axis=0)   # (3, 128)

    return (w1_bd, wsc_bd, sel_bd, w2_bd, w3_bd, w4_bd, bias)


# ---------------- wrapper ----------------
def per_residue_encoder(aa, phi, phi_mask, psi, psi_mask,
                        chi, chi_mask, mask_residue, params):
    N, L = aa.shape
    R = N * L
    f32 = jnp.float32

    dihed = jnp.concatenate([phi[..., None], psi[..., None], chi],
                            axis=-1).reshape(R, NUM_DIHED).astype(f32)
    dmask = jnp.concatenate([phi_mask[..., None], psi_mask[..., None], chi_mask],
                            axis=-1).reshape(R, NUM_DIHED).astype(f32)
    resm = mask_residue.reshape(R, 1).astype(f32)

    # exact f32 trig arguments: per angle, 5 sin args (x*f) then 5 cos args (x*f + pi/2)
    uf = jnp.asarray(UNIQUE_FREQS, f32)                              # (5,)
    zs = dihed[:, :, None] * uf                                      # (R, 6, 5)
    z = jnp.concatenate([zs, zs + (np.pi / 2.0)], axis=-1).reshape(R, TRIG_PER_RES)

    onehot = jax.nn.one_hot(aa.reshape(R), MAX_AA_TYPES, dtype=f32)  # (R, 22)
    xm = dihed * dmask                                               # (R, 6)

    # row tiling: 4 residues per sublane row; choose the tile so the grid has >=2
    # steps whenever possible (both TensorCores on v7x); rows padded to tile size.
    G = -(-R // NUM_PACK)
    TG = min(TG_MAX, max(8, ((-(-G // 2) + 7) // 8) * 8))
    G_pad = ((G + TG - 1) // TG) * TG
    R_pad = G_pad * NUM_PACK

    def grp(x):
        # (R, w) -> zero-pad rows to R_pad -> (G_pad, 4*w), residue-major per block.
        # Padded residues are all-zero (incl. residue mask) and are sliced off below.
        return jnp.pad(x, ((0, R_pad - R), (0, 0))).reshape(G_pad, NUM_PACK * x.shape[1])

    packed = jnp.concatenate(
        [grp(z), grp(onehot), grp(xm), grp(dmask), grp(resm),
         jnp.zeros((G_pad, PAD_W), f32)], axis=-1)                   # (G_pad, 384)

    weights = _derived_weights(params)

    out = pl.pallas_call(
        per_residue_encoder_kernel,
        out_shape=jax.ShapeDtypeStruct((G_pad, OUT_W), f32),
        grid=(G_pad // TG,),
        in_specs=[pl.BlockSpec((TG, PACK_W), lambda i: (i, 0))]      # row-tiled slab
                 + [pl.BlockSpec(w.shape, lambda i: (0, 0)) for w in weights],  # resident
        out_specs=pl.BlockSpec((TG, OUT_W), lambda i: (i, 0)),
        compiler_params=pltpu.CompilerParams(
            dimension_semantics=("parallel",)),
    )(packed, *weights)

    return out.reshape(R_pad, FEAT_DIM)[:R].reshape(N, L, FEAT_DIM)


# ---------------- pure-JAX reference (PyTorch semantics) ----------------
def reference(aa, phi, phi_mask, psi, psi_mask, chi, chi_mask, mask_residue, p):
    hp = jax.lax.Precision.HIGHEST
    N, L = aa.shape
    aa_feat = p["embed"][aa]                                         # (N, L, F)
    dihed = jnp.concatenate([phi[..., None], psi[..., None], chi], -1)
    dmask = jnp.concatenate([phi_mask[..., None], psi_mask[..., None], chi_mask], -1)
    freqs = jnp.array(FREQ_BANDS, dtype=jnp.float32)
    x = dihed[..., None]                                             # (N, L, 6, 1)
    code = jnp.concatenate([x, jnp.sin(x * freqs), jnp.cos(x * freqs)], -1)
    code = code * dmask[..., None]                                   # (N, L, 6, 13)
    dfeat = code.reshape(N, L, -1)                                   # (N, L, 78)
    feat = jnp.concatenate([aa_feat, dfeat], -1)                     # (N, L, 110)
    h = jax.nn.relu(jnp.dot(feat, p["w1"], precision=hp) + p["b1"][0])
    h = jax.nn.relu(jnp.dot(h, p["w2"], precision=hp) + p["b2"][0])
    h = jax.nn.relu(jnp.dot(h, p["w3"], precision=hp) + p["b3"][0])
    h = jnp.dot(h, p["w4"], precision=hp) + p["b4"][0]
    return h * mask_residue[..., None]


# ---------------- parameter init (deterministic, synthetic) ----------------
def init_params(key):
    ks = jax.random.split(key, 9)
    def lin(k, fan_in, fan_out):
        bound = 1.0 / np.sqrt(fan_in)
        kw, kb = jax.random.split(k)
        w = jax.random.uniform(kw, (fan_in, fan_out), jnp.float32, -bound, bound)
        b = jax.random.uniform(kb, (1, fan_out), jnp.float32, -bound, bound)
        return w, b
    embed = jax.random.normal(ks[0], (MAX_AA_TYPES, FEAT_DIM), jnp.float32)
    w1, b1 = lin(ks[1], IN_FEAT, HIDDEN)
    w2, b2 = lin(ks[2], HIDDEN, FEAT_DIM)
    w3, b3 = lin(ks[3], FEAT_DIM, FEAT_DIM)
    w4, b4 = lin(ks[4], FEAT_DIM, FEAT_DIM)
    return dict(embed=embed, w1=w1, b1=b1, w2=w2, b2=b2,
                w3=w3, b3=b3, w4=w4, b4=b4)


if __name__ == "__main__":
    key = jax.random.PRNGKey(0)
    kp, k1, k2, k3, k4, k5, k6, k7, k8 = jax.random.split(key, 9)

    N, L = 2, 8
    params = init_params(kp)

    aa = jax.random.randint(k1, (N, L), 0, MAX_AA_TYPES, dtype=jnp.int32)
    phi = jax.random.uniform(k2, (N, L), jnp.float32, -np.pi, np.pi)
    psi = jax.random.uniform(k3, (N, L), jnp.float32, -np.pi, np.pi)
    chi = jax.random.uniform(k4, (N, L, 4), jnp.float32, -np.pi, np.pi)
    phi_mask = jax.random.bernoulli(k5, 0.8, (N, L)).astype(jnp.float32)
    psi_mask = jax.random.bernoulli(k6, 0.8, (N, L)).astype(jnp.float32)
    chi_mask = jax.random.bernoulli(k7, 0.8, (N, L, 4)).astype(jnp.float32)
    mask_residue = jax.random.bernoulli(k8, 0.9, (N, L)).astype(jnp.float32)

    out = per_residue_encoder(aa, phi, phi_mask, psi, psi_mask,
                              chi, chi_mask, mask_residue, params)
    out = jax.block_until_ready(out)

    ref = reference(aa, phi, phi_mask, psi, psi_mask,
                    chi, chi_mask, mask_residue, params)
    # tolerance accommodates TPU matmul-precision differences (MXU f32 passes /
    # default XLA matmul precision) between the kernel and the HIGHEST-precision ref.
    np.testing.assert_allclose(np.asarray(out), np.asarray(ref),
                               rtol=5e-3, atol=5e-3)
    print("KERNEL_OK")
</pallas_src>

<mosaic_0001>
module attributes {stable_mosaic.version = 11 : i64} {
  func.func @per_residue_encoder_kernel(%arg0: i32, %arg1: memref<8x384xf32, #tpu.memory_space<vmem>>, %arg2: memref<384x256xf32, #tpu.memory_space<vmem>>, %arg3: memref<240x256xf32, #tpu.memory_space<vmem>>, %arg4: memref<384x368xf32, #tpu.memory_space<vmem>>, %arg5: memref<256x128xf32, #tpu.memory_space<vmem>>, %arg6: memref<128x128xf32, #tpu.memory_space<vmem>>, %arg7: memref<128x128xf32, #tpu.memory_space<vmem>>, %arg8: memref<3x128xf32, #tpu.memory_space<vmem>>, %arg9: memref<8x128xf32, #tpu.memory_space<vmem>>) attributes {dimension_semantics = [#tpu.dimension_semantics<parallel>], iteration_bounds = array<i64: 1>, scalar_prefetch = 0 : i64, scratch_operands = 0 : i64, tpu.core_type = #tpu.core_type<tc>, window_params = [{transform_indices = @transform_0, window_bounds = array<i64: 8, 384>}, {pipeline_mode = #tpu.pipeline_mode<synchronous>, transform_indices = @transform_1, window_bounds = array<i64: 384, 256>}, {pipeline_mode = #tpu.pipeline_mode<synchronous>, transform_indices = @transform_2, window_bounds = array<i64: 240, 256>}, {pipeline_mode = #tpu.pipeline_mode<synchronous>, transform_indices = @transform_3, window_bounds = array<i64: 384, 368>}, {pipeline_mode = #tpu.pipeline_mode<synchronous>, transform_indices = @transform_4, window_bounds = array<i64: 256, 128>}, {pipeline_mode = #tpu.pipeline_mode<synchronous>, transform_indices = @transform_5, window_bounds = array<i64: 128, 128>}, {pipeline_mode = #tpu.pipeline_mode<synchronous>, transform_indices = @transform_6, window_bounds = array<i64: 128, 128>}, {pipeline_mode = #tpu.pipeline_mode<synchronous>, transform_indices = @transform_7, window_bounds = array<i64: 3, 128>}, {transform_indices = @transform_8, window_bounds = array<i64: 8, 128>}]} {
    %c0 = arith.constant 0 : index
    %c0_0 = arith.constant 0 : index
    %0 = vector.load %arg1[%c0, %c0_0] : memref<8x384xf32, #tpu.memory_space<vmem>>, vector<8x384xf32>
    %1 = vector.extract_strided_slice %0 {offsets = [0, 0], sizes = [8, 240], strides = [1, 1]} : vector<8x384xf32> to vector<8x240xf32>
    %2 = math.sin %1 : vector<8x240xf32>
    %c0_1 = arith.constant 0 : index
    %c0_2 = arith.constant 0 : index
    %3 = vector.load %arg4[%c0_1, %c0_2] : memref<384x368xf32, #tpu.memory_space<vmem>>, vector<384x368xf32>
    %cst = arith.constant dense<0.000000e+00> : vector<8x368xf32>
    %4 = tpu.matmul %0, %3, %cst {dimension_numbers = #tpu.dot_dimension_numbers<[1], [0], [0], [1], [0, 0, 1, 1], [], []>} : vector<8x384xf32>, vector<384x368xf32>, vector<8x368xf32> -> vector<8x368xf32>
    %5 = vector.extract_strided_slice %4 {offsets = [0, 0], sizes = [8, 128], strides = [1, 1]} : vector<8x368xf32> to vector<8x128xf32>
    %6 = vector.extract_strided_slice %4 {offsets = [0, 128], sizes = [8, 240], strides = [1, 1]} : vector<8x368xf32> to vector<8x240xf32>
    %7 = arith.mulf %2, %6 : vector<8x240xf32>
    %c0_3 = arith.constant 0 : index
    %c0_4 = arith.constant 0 : index
    %8 = vector.load %arg2[%c0_3, %c0_4] : memref<384x256xf32, #tpu.memory_space<vmem>>, vector<384x256xf32>
    %cst_5 = arith.constant dense<0.000000e+00> : vector<8x256xf32>
    %9 = tpu.matmul %0, %8, %cst_5 {dimension_numbers = #tpu.dot_dimension_numbers<[1], [0], [0], [1], [0, 0, 1, 1], [], []>} : vector<8x384xf32>, vector<384x256xf32>, vector<8x256xf32> -> vector<8x256xf32>
    %c0_6 = arith.constant 0 : index
    %c0_7 = arith.constant 0 : index
    %10 = vector.load %arg3[%c0_6, %c0_7] : memref<240x256xf32, #tpu.memory_space<vmem>>, vector<240x256xf32>
    %cst_8 = arith.constant dense<0.000000e+00> : vector<8x256xf32>
    %11 = tpu.matmul %7, %10, %cst_8 {dimension_numbers = #tpu.dot_dimension_numbers<[1], [0], [0], [1], [0, 0, 1, 1], [], []>} : vector<8x240xf32>, vector<240x256xf32>, vector<8x256xf32> -> vector<8x256xf32>
    %12 = arith.addf %9, %11 : vector<8x256xf32>
    %cst_9 = arith.constant 0.000000e+00 : f32
    %13 = vector.broadcast %cst_9 : f32 to vector<8x256xf32>
    %14 = arith.maximumf %12, %13 : vector<8x256xf32>
    %c0_10 = arith.constant 0 : index
    %c0_11 = arith.constant 0 : index
    %15 = vector.load %arg5[%c0_10, %c0_11] : memref<256x128xf32, #tpu.memory_space<vmem>>, vector<256x128xf32>
    %cst_12 = arith.constant dense<0.000000e+00> : vector<8x128xf32>
    %16 = tpu.matmul %14, %15, %cst_12 {dimension_numbers = #tpu.dot_dimension_numbers<[1], [0], [0], [1], [0, 0, 1, 1], [], []>} : vector<8x256xf32>, vector<256x128xf32>, vector<8x128xf32> -> vector<8x128xf32>
    %c0_13 = arith.constant 0 : index
    %c0_14 = arith.constant 0 : index
    %17 = vector.load %arg8[%c0_13, %c0_14] : memref<3x128xf32, #tpu.memory_space<vmem>>, vector<1x128xf32>
    %18 = vector.broadcast %17 : vector<1x128xf32> to vector<8x128xf32>
    %19 = arith.addf %16, %18 : vector<8x128xf32>
    %cst_15 = arith.constant 0.000000e+00 : f32
    %20 = vector.broadcast %cst_15 : f32 to vector<8x128xf32>
    %21 = arith.maximumf %19, %20 : vector<8x128xf32>
    %c0_16 = arith.constant 0 : index
    %c0_17 = arith.constant 0 : index
    %22 = vector.load %arg6[%c0_16, %c0_17] : memref<128x128xf32, #tpu.memory_space<vmem>>, vector<128x128xf32>
    %cst_18 = arith.constant dense<0.000000e+00> : vector<8x128xf32>
    %23 = tpu.matmul %21, %22, %cst_18 {dimension_numbers = #tpu.dot_dimension_numbers<[1], [0], [0], [1], [0, 0, 1, 1], [], []>} : vector<8x128xf32>, vector<128x128xf32>, vector<8x128xf32> -> vector<8x128xf32>
    %c1 = arith.constant 1 : index
    %c0_19 = arith.constant 0 : index
    %24 = vector.load %arg8[%c1, %c0_19] : memref<3x128xf32, #tpu.memory_space<vmem>>, vector<1x128xf32>
    %25 = vector.broadcast %24 : vector<1x128xf32> to vector<8x128xf32>
    %26 = arith.addf %23, %25 : vector<8x128xf32>
    %cst_20 = arith.constant 0.000000e+00 : f32
    %27 = vector.broadcast %cst_20 : f32 to vector<8x128xf32>
    %28 = arith.maximumf %26, %27 : vector<8x128xf32>
    %c0_21 = arith.constant 0 : index
    %c0_22 = arith.constant 0 : index
    %29 = vector.load %arg7[%c0_21, %c0_22] : memref<128x128xf32, #tpu.memory_space<vmem>>, vector<128x128xf32>
    %cst_23 = arith.constant dense<0.000000e+00> : vector<8x128xf32>
    %30 = tpu.matmul %28, %29, %cst_23 {dimension_numbers = #tpu.dot_dimension_numbers<[1], [0], [0], [1], [0, 0, 1, 1], [], []>} : vector<8x128xf32>, vector<128x128xf32>, vector<8x128xf32> -> vector<8x128xf32>
    %c2 = arith.constant 2 : index
    %c0_24 = arith.constant 0 : index
    %31 = vector.load %arg8[%c2, %c0_24] : memref<3x128xf32, #tpu.memory_space<vmem>>, vector<1x128xf32>
    %32 = vector.broadcast %31 : vector<1x128xf32> to vector<8x128xf32>
    %33 = arith.addf %30, %32 : vector<8x128xf32>
    %34 = arith.mulf %33, %5 : vector<8x128xf32>
    %c0_25 = arith.constant 0 : index
    %c0_26 = arith.constant 0 : index
    %35 = vector.load %arg9[%c0_25, %c0_26] : memref<8x128xf32, #tpu.memory_space<vmem>>, vector<8x128xf32>
    tpu.vector_store %arg9[%c0_25, %c0_26], %34 {strides = array<i32>} : memref<8x128xf32, #tpu.memory_space<vmem>>, vector<8x128xf32>,
    return
  }
  func.func @transform_0(%arg0: i32) -> (i32, i32) {
    %c0_i32 = arith.constant 0 : i32
    %c0_i32_0 = arith.constant 0 : i32
    return %arg0, %c0_i32 : i32, i32
  }
  func.func @transform_1(%arg0: i32) -> (i32, i32) {
    %c0_i32 = arith.constant 0 : i32
    %c0_i32_0 = arith.constant 0 : i32
    %c0_i32_1 = arith.constant 0 : i32
    return %c0_i32, %c0_i32_0 : i32, i32
  }
  func.func @transform_2(%arg0: i32) -> (i32, i32) {
    %c0_i32 = arith.constant 0 : i32
    %c0_i32_0 = arith.constant 0 : i32
    %c0_i32_1 = arith.constant 0 : i32
    return %c0_i32, %c0_i32_0 : i32, i32
  }
  func.func @transform_3(%arg0: i32) -> (i32, i32) {
    %c0_i32 = arith.constant 0 : i32
    %c0_i32_0 = arith.constant 0 : i32
    %c0_i32_1 = arith.constant 0 : i32
    return %c0_i32, %c0_i32_0 : i32, i32
  }
  func.func @transform_4(%arg0: i32) -> (i32, i32) {
    %c0_i32 = arith.constant 0 : i32
    %c0_i32_0 = arith.constant 0 : i32
    %c0_i32_1 = arith.constant 0 : i32
    return %c0_i32, %c0_i32_0 : i32, i32
  }
  func.func @transform_5(%arg0: i32) -> (i32, i32) {
    %c0_i32 = arith.constant 0 : i32
    %c0_i32_0 = arith.constant 0 : i32
    %c0_i32_1 = arith.constant 0 : i32
    return %c0_i32, %c0_i32_0 : i32, i32
  }
  func.func @transform_6(%arg0: i32) -> (i32, i32) {
    %c0_i32 = arith.constant 0 : i32
    %c0_i32_0 = arith.constant 0 : i32
    %c0_i32_1 = arith.constant 0 : i32
    return %c0_i32, %c0_i32_0 : i32, i32
  }
  func.func @transform_7(%arg0: i32) -> (i32, i32) {
    %c0_i32 = arith.constant 0 : i32
    %c0_i32_0 = arith.constant 0 : i32
    %c0_i32_1 = arith.constant 0 : i32
    return %c0_i32, %c0_i32_0 : i32, i32
  }
  func.func @transform_8(%arg0: i32) -> (i32, i32) {
    %c0_i32 = arith.constant 0 : i32
    %c0_i32_0 = arith.constant 0 : i32
    return %arg0, %c0_i32 : i32, i32
  }
}

</mosaic_0001>

<bundles_post_ra>
// kernel: tpu_custom_call.1
= control target key start
LH: loop header
LB: loop body
LE: loop exit
PB: predicated region body
PF: predicated region fallthrough
CT: control target
= control target key end

     0   :  { %s2684_s0 = inlined_call_operand.vmem [shape: f32[8,384], index: 0, kind: input, shape index: {}]   ;;  %s2685_s1 = inlined_call_operand.vmem [shape: f32[384,256], index: 1, kind: input, shape index: {}]   ;;  %s2686_s2 = inlined_call_operand.vmem [shape: f32[240,256], index: 2, kind: input, shape index: {}]   ;;  %s2687_s3 = inlined_call_operand.vmem [shape: f32[384,368], index: 3, kind: input, shape index: {}]   ;;  %s2688_s4 = inlined_call_operand.vmem [shape: f32[256,128], index: 4, kind: input, shape index: {}]   ;;  %s2689_s5 = inlined_call_operand.vmem [shape: f32[128,128], index: 5, kind: input, shape index: {}]   ;;  %s2690_s6 = inlined_call_operand.vmem [shape: f32[128,128], index: 6, kind: input, shape index: {}]   ;;  %s2691_s7 = inlined_call_operand.vmem [shape: f32[3,128], index: 7, kind: input, shape index: {}]   ;;  %s2692_s8 = inlined_call_operand.hbm [shape: f32[8,128], index: 8, kind: output, shape index: {}]  }
   0x1   :  { %v388_v0 = vld [vmem:[%s2687_s3 + $0x168] sm:$0xff]  ;;  %v385_v1 = vld [vmem:[%s2687_s3 + $0x150] sm:$0xff]  ;;  %v382_v2 = vld [vmem:[%s2687_s3 + $0x138] sm:$0xff] }
   0x2   :  { %487 = vmatpush.msra.mxu0 %v388_v0  ;;  %v379_v3 = vld [vmem:[%s2687_s3 + $0x120] sm:$0xff]  ;;  %v436_v4 = vld [vmem:[%s2687_s3 + $0x2e8] sm:$0xff]  ;;  %v389_v6 = vld [vmem:[%s2687_s3 + $0x170] sm:$0xff] }
   0x3   :  { %v484_v5 = vld [vmem:[%s2687_s3 + $0x468] sm:$0xff]  ;;  %507 = vmatpush.msra.mxu1 %v436_v4  ;;  %v433_v7 = vld [vmem:[%s2687_s3 + $0x2d0] sm:$0xff]  ;;  %547 = vmatpush.msra.mxu3 %v389_v6  ;;  %v386_v10 = vld [vmem:[%s2687_s3 + $0x158] sm:$0xff] }
   0x4   :  { %488 = vmatpush.msra.mxu0 %v385_v1  ;;  %v481_v8 = vld [vmem:[%s2687_s3 + $0x450] sm:$0xff]  ;;  %v376_v9 = vld [vmem:[%s2687_s3 + $0x108] sm:$0xff]  ;;  %527 = vmatpush.msra.mxu2 %v484_v5  ;;  %v430_v11 = vld [vmem:[%s2687_s3 + $0x2b8] sm:$0xff] }
   0x5   :  { %508 = vmatpush.msra.mxu1 %v433_v7  ;;  %v478_v12 = vld [vmem:[%s2687_s3 + $0x438] sm:$0xff]  ;;  %v383_v13 = vld [vmem:[%s2687_s3 + $0x140] sm:$0xff]  ;;  %v373_v14 = vld [vmem:[%s2687_s3 + $0xf0] sm:$0xff]  ;;  %548 = vmatpush.msra.mxu3 %v386_v10 }
   0x6   :  { %489 = vmatpush.msra.mxu0 %v382_v2  ;;  %528 = vmatpush.msra.mxu2 %v481_v8  ;;  %v427_v15 = vld [vmem:[%s2687_s3 + $0x2a0] sm:$0xff]  ;;  %v380_v17 = vld [vmem:[%s2687_s3 + $0x128] sm:$0xff]  ;;  %v370_v18 = vld [vmem:[%s2687_s3 + $0xd8] sm:$0xff] }
   0x7   :  { %509 = vmatpush.msra.mxu1 %v430_v11  ;;  %v475_v16 = vld [vmem:[%s2687_s3 + $0x420] sm:$0xff]  ;;  %549 = vmatpush.msra.mxu3 %v383_v13  ;;  %v424_v19 = vld [vmem:[%s2687_s3 + $0x288] sm:$0xff]  ;;  %v377_v21 = vld [vmem:[%s2687_s3 + $0x110] sm:$0xff] }
   0x8   :  { %490 = vmatpush.msra.mxu0 %v379_v3  ;;  %529 = vmatpush.msra.mxu2 %v478_v12  ;;  %v472_v20 = vld [vmem:[%s2687_s3 + $0x408] sm:$0xff]  ;;  %v367_v22 = vld [vmem:[%s2687_s3 + $0xc0] sm:$0xff]  ;;  %v421_v23 = vld [vmem:[%s2687_s3 + $0x270] sm:$0xff] }
   0x9   :  { %510 = vmatpush.msra.mxu1 %v427_v15  ;;  %550 = vmatpush.msra.mxu3 %v380_v17  ;;  %v469_v24 = vld [vmem:[%s2687_s3 + $0x3f0] sm:$0xff]  ;;  %v374_v25 = vld [vmem:[%s2687_s3 + $0xf8] sm:$0xff]  ;;  %v364_v26 = vld [vmem:[%s2687_s3 + $0xa8] sm:$0xff] }
   0xa   :  { %491 = vmatpush.msra.mxu0 %v376_v9  ;;  %530 = vmatpush.msra.mxu2 %v475_v16  ;;  %v418_v27 = vld [vmem:[%s2687_s3 + $0x258] sm:$0xff]  ;;  %v371_v29 = vld [vmem:[%s2687_s3 + $0xe0] sm:$0xff]  ;;  %v361_v30 = vld [vmem:[%s2687_s3 + $0x90] sm:$0xff] }
   0xb   :  { %511 = vmatpush.msra.mxu1 %v424_v19  ;;  %551 = vmatpush.msra.mxu3 %v377_v21  ;;  %v466_v28 = vld [vmem:[%s2687_s3 + $0x3d8] sm:$0xff]  ;;  %v415_v31 = vld [vmem:[%s2687_s3 + $0x240] sm:$0xff]  ;;  %v368_v33 = vld [vmem:[%s2687_s3 + $0xc8] sm:$0xff] }
   0xc   :  { %492 = vmatpush.msra.mxu0 %v373_v14  ;;  %531 = vmatpush.msra.mxu2 %v472_v20  ;;  %v463_v32 = vld [vmem:[%s2687_s3 + $0x3c0] sm:$0xff]  ;;  %v358_v34 = vld [vmem:[%s2687_s3 + $0x78] sm:$0xff]  ;;  %v412_v35 = vld [vmem:[%s2687_s3 + $0x228] sm:$0xff] }
   0xd   :  { %512 = vmatpush.msra.mxu1 %v421_v23  ;;  %552 = vmatpush.msra.mxu3 %v374_v25  ;;  %v460_v36 = vld [vmem:[%s2687_s3 + $0x3a8] sm:$0xff]  ;;  %v365_v37 = vld [vmem:[%s2687_s3 + $0xb0] sm:$0xff]  ;;  %v355_v38 = vld [vmem:[%s2687_s3 + $0x60] sm:$0xff] }
   0xe   :  { %493 = vmatpush.msra.mxu0 %v370_v18  ;;  %532 = vmatpush.msra.mxu2 %v469_v24  ;;  %v409_v39 = vld [vmem:[%s2687_s3 + $0x210] sm:$0xff]  ;;  %v362_v41 = vld [vmem:[%s2687_s3 + $0x98] sm:$0xff]  ;;  %v352_v42 = vld [vmem:[%s2687_s3 + $0x48] sm:$0xff] }
   0xf   :  { %513 = vmatpush.msra.mxu1 %v418_v27  ;;  %553 = vmatpush.msra.mxu3 %v371_v29  ;;  %v457_v40 = vld [vmem:[%s2687_s3 + $0x390] sm:$0xff]  ;;  %v406_v43 = vld [vmem:[%s2687_s3 + $0x1f8] sm:$0xff]  ;;  %v359_v45 = vld [vmem:[%s2687_s3 + $0x80] sm:$0xff] }
  0x10   :  { %494 = vmatpush.msra.mxu0 %v367_v22  ;;  %533 = vmatpush.msra.mxu2 %v466_v28  ;;  %v454_v44 = vld [vmem:[%s2687_s3 + $0x378] sm:$0xff]  ;;  %v349_v46 = vld [vmem:[%s2687_s3 + $0x30] sm:$0xff]  ;;  %v403_v47 = vld [vmem:[%s2687_s3 + $0x1e0] sm:$0xff] }
  0x11   :  { %514 = vmatpush.msra.mxu1 %v415_v31  ;;  %554 = vmatpush.msra.mxu3 %v368_v33  ;;  %v451_v48 = vld [vmem:[%s2687_s3 + $0x360] sm:$0xff]  ;;  %v356_v49 = vld [vmem:[%s2687_s3 + $0x68] sm:$0xff]  ;;  %v346_v50 = vld [vmem:[%s2687_s3 + $0x18] sm:$0xff] }
  0x12   :  { %495 = vmatpush.msra.mxu0 %v364_v26  ;;  %534 = vmatpush.msra.mxu2 %v463_v32  ;;  %v400_v51 = vld [vmem:[%s2687_s3 + $0x1c8] sm:$0xff]  ;;  %v353_v53 = vld [vmem:[%s2687_s3 + $0x50] sm:$0xff]  ;;  %v343_v54 = vld [vmem:[%s2687_s3] sm:$0xff] }
  0x13   :  { %515 = vmatpush.msra.mxu1 %v412_v35  ;;  %555 = vmatpush.msra.mxu3 %v365_v37  ;;  %v448_v52 = vld [vmem:[%s2687_s3 + $0x348] sm:$0xff]  ;;  %v397_v55 = vld [vmem:[%s2687_s3 + $0x1b0] sm:$0xff]  ;;  %v350_v58 = vld [vmem:[%s2687_s3 + $0x38] sm:$0xff] }
  0x14   :  { %496 = vmatpush.msra.mxu0 %v361_v30  ;;  %535 = vmatpush.msra.mxu2 %v460_v36  ;;  %v437_v56 = vld [vmem:[%s2687_s3 + $0x2f0] sm:$0xff]  ;;  %v394_v59 = vld [vmem:[%s2687_s3 + $0x198] sm:$0xff]  ;;  %v347_v62 = vld [vmem:[%s2687_s3 + $0x20] sm:$0xff] }
  0x15   :  { %516 = vmatpush.msra.mxu1 %v409_v39  ;;  %556 = vmatpush.msra.mxu3 %v362_v41  ;;  %v445_v57 = vld [vmem:[%s2687_s3 + $0x330] sm:$0xff]  ;;  %v434_v60 = vld [vmem:[%s2687_s3 + $0x2d8] sm:$0xff]  ;;  %v391_v63 = vld [vmem:[%s2687_s3 + $0x180] sm:$0xff] }
  0x16   :  { %497 = vmatpush.msra.mxu0 %v358_v34  ;;  %536 = vmatpush.msra.mxu2 %v457_v40  ;;  %v442_v61 = vld [vmem:[%s2687_s3 + $0x318] sm:$0xff]  ;;  %v431_v0 = vld [vmem:[%s2687_s3 + $0x2c0] sm:$0xff]  ;;  %v344_v2 = vld [vmem:[%s2687_s3 + $0x8] sm:$0xff] }
  0x17   :  { %517 = vmatpush.msra.mxu1 %v406_v43  ;;  %557 = vmatpush.msra.mxu3 %v359_v45  ;;  %v439_v1 = vld [vmem:[%s2687_s3 + $0x300] sm:$0xff]  ;;  %v485_v3 = vld [vmem:[%s2687_s3 + $0x470] sm:$0xff]  ;;  %v428_v4 = vld [vmem:[%s2687_s3 + $0x2a8] sm:$0xff] }
  0x18   :  { %498 = vmatpush.msra.mxu0 %v355_v38  ;;  %537 = vmatpush.msra.mxu2 %v454_v44  ;;  %v390_v5 = vld [vmem:[%s2687_s3 + $0x178] sm:$0xff]  ;;  %v425_v8 = vld [vmem:[%s2687_s3 + $0x290] sm:$0xff]  ;;  %v387_v9 = vld [vmem:[%s2687_s3 + $0x160] sm:$0xff] }
  0x19   :  { %518 = vmatpush.msra.mxu1 %v403_v47  ;;  %558 = vmatpush.msra.mxu3 %v356_v49  ;;  %v438_v6 = vld [vmem:[%s2687_s3 + $0x2f8] sm:$0xff]  ;;  %v435_v10 = vld [vmem:[%s2687_s3 + $0x2e0] sm:$0xff]  ;;  %v1530_v11 = vld [vmem:[%s2684_s0 + $0x10] sm:$0xff] }
  0x1a   :  { %499 = vmatpush.msra.mxu0 %v352_v42  ;;  %538 = vmatpush.msra.mxu2 %v451_v48  ;;  %v482_v7 = vld [vmem:[%s2687_s3 + $0x458] sm:$0xff]  ;;  %v479_v13 = vld [vmem:[%s2687_s3 + $0x440] sm:$0xff]  ;;  %v384_v14 = vld [vmem:[%s2687_s3 + $0x148] sm:$0xff] }
  0x1b   :  { %519 = vmatpush.msra.mxu1 %v400_v51  ;;  %559 = vmatpush.msra.mxu3 %v353_v53  ;;  %v422_v12 = vld [vmem:[%s2687_s3 + $0x278] sm:$0xff]  ;;  %v432_v15 = vld [vmem:[%s2687_s3 + $0x2c8] sm:$0xff] }
  0x1c   :  { %500 = vmatpush.msra.mxu0 %v349_v46  ;;  %539 = vmatpush.msra.mxu2 %v448_v52 }
  0x1d   :  { %520 = vmatpush.msra.mxu1 %v397_v55  ;;  %560 = vmatpush.msra.mxu3 %v350_v58 }
  0x1e   :  { %501 = vmatpush.msra.mxu0 %v346_v50  ;;  %540 = vmatpush.msra.mxu2 %v445_v57 }
  0x1f   :  { %521 = vmatpush.msra.mxu1 %v394_v59  ;;  %561 = vmatpush.msra.mxu3 %v347_v62 }
  0x20   :  { %502 = vmatpush.msra.mxu0 %v343_v54  ;;  %541 = vmatpush.msra.mxu2 %v442_v61 }
  0x21   :  { %522 = vmatpush.msra.mxu1 %v391_v63  ;;  %562 = vmatpush.msra.mxu3 %v344_v2 }
  0x22   :  { %567 = vmatpush.msrb.mxu0 %v437_v56  ;;  %542 = vmatpush.msra.mxu2 %v439_v1 }
  0x23   :  { %587 = vmatpush.msrb.mxu1 %v485_v3  ;;  %627 = vmatpush.msrb.mxu3 %v438_v6 }
  0x24   :  { %568 = vmatpush.msrb.mxu0 %v434_v60  ;;  %607 = vmatpush.msrb.mxu2 %v390_v5 }
  0x25   :  { %588 = vmatpush.msrb.mxu1 %v482_v7 }
  0x26   :  { %569 = vmatpush.msrb.mxu0 %v431_v0  ;;  %608 = vmatpush.msrb.mxu2 %v387_v9 }
  0x28   :  { %570 = vmatpush.msrb.mxu0 %v428_v4 }
  0x2a   :  { %571 = vmatpush.msrb.mxu0 %v425_v8 }
  0x2b   :  { %13 = vsyncpa [#allocation3], 0  ;;  %v419_v16 = vld [vmem:[%s2687_s3 + $0x260] sm:$0xff]  ;;  %628 = vmatpush.msrb.mxu3 %v435_v10  ;;  %543 = vmatmul.f32.vlgmr.msra.gmra.mxu2 %v1530_v11  ;;  %v476_v17 = vld [vmem:[%s2687_s3 + $0x428] sm:$0xff] }
  0x2c   :  { %572 = vmatpush.msrb.mxu0 %v422_v12  ;;  %589 = vmatpush.msrb.mxu1 %v479_v13  ;;  %v381_v18 = vld [vmem:[%s2687_s3 + $0x130] sm:$0xff]  ;;  %v416_v20 = vld [vmem:[%s2687_s3 + $0x248] sm:$0xff]  ;;  %v1568_v22 = vld [vmem:[%s2684_s0] sm:$0xff] }
  0x2d   :  { %v429_v19 = vld [vmem:[%s2687_s3 + $0x2b0] sm:$0xff]  ;;  %609 = vmatpush.msrb.mxu2 %v384_v14  ;;  %629 = vmatpush.msrb.mxu3 %v432_v15  ;;  %v1563_v21 = vld [vmem:[%s2684_s0 + $0x8] sm:$0xff]  ;;  %v378_v25 = vld [vmem:[%s2687_s3 + $0x118] sm:$0xff] }
  0x2e   :  { %573 = vmatpush.msrb.mxu0 %v419_v16  ;;  %590 = vmatpush.msrb.mxu1 %v476_v17  ;;  %v473_v23 = vld [vmem:[%s2687_s3 + $0x410] sm:$0xff]  ;;  %v426_v26 = vld [vmem:[%s2687_s3 + $0x298] sm:$0xff]  ;;  %v375_v29 = vld [vmem:[%s2687_s3 + $0x100] sm:$0xff] }
  0x2f   :  { %v413_v24 = vld [vmem:[%s2687_s3 + $0x230] sm:$0xff]  ;;  %610 = vmatpush.msrb.mxu2 %v381_v18  ;;  %630 = vmatpush.msrb.mxu3 %v429_v19  ;;  %v470_v27 = vld [vmem:[%s2687_s3 + $0x3f8] sm:$0xff]  ;;  %v423_v30 = vld [vmem:[%s2687_s3 + $0x280] sm:$0xff] }
  0x30   :  { %574 = vmatpush.msrb.mxu0 %v416_v20  ;;  %523 = vmatmul.f32.vlgmr.msra.gmra.mxu1 %v1563_v21  ;;  %v410_v28 = vld [vmem:[%s2687_s3 + $0x218] sm:$0xff]  ;;  %v467_v31 = vld [vmem:[%s2687_s3 + $0x3e0] sm:$0xff]  ;;  %v372_v33 = vld [vmem:[%s2687_s3 + $0xe8] sm:$0xff] }
  0x31   :  { %503 = vmatmul.f32.vlgmr.msra.gmra.mxu0 %v1568_v22  ;;  %591 = vmatpush.msrb.mxu1 %v473_v23  ;;  %v407_v32 = vld [vmem:[%s2687_s3 + $0x200] sm:$0xff]  ;;  %v420_v34 = vld [vmem:[%s2687_s3 + $0x268] sm:$0xff]  ;;  %v369_v37 = vld [vmem:[%s2687_s3 + $0xd0] sm:$0xff] }
  0x32   :  { %575 = vmatpush.msrb.mxu0 %v413_v24  ;;  %611 = vmatpush.msrb.mxu2 %v378_v25  ;;  %v464_v35 = vld [vmem:[%s2687_s3 + $0x3c8] sm:$0xff]  ;;  %v417_v38 = vld [vmem:[%s2687_s3 + $0x250] sm:$0xff]  ;;  %v366_v41 = vld [vmem:[%s2687_s3 + $0xb8] sm:$0xff] }
  0x33   :  { %631 = vmatpush.msrb.mxu3 %v426_v26  ;;  %592 = vmatpush.msrb.mxu1 %v470_v27  ;;  %v404_v36 = vld [vmem:[%s2687_s3 + $0x1e8] sm:$0xff]  ;;  %v461_v39 = vld [vmem:[%s2687_s3 + $0x3b0] sm:$0xff]  ;;  %v414_v42 = vld [vmem:[%s2687_s3 + $0x238] sm:$0xff] }
  0x34   :  { %576 = vmatpush.msrb.mxu0 %v410_v28  ;;  %612 = vmatpush.msrb.mxu2 %v375_v29  ;;  %v401_v40 = vld [vmem:[%s2687_s3 + $0x1d0] sm:$0xff]  ;;  %v458_v43 = vld [vmem:[%s2687_s3 + $0x398] sm:$0xff]  ;;  %v363_v45 = vld [vmem:[%s2687_s3 + $0xa0] sm:$0xff] }
  0x35   :  { %632 = vmatpush.msrb.mxu3 %v423_v30  ;;  %593 = vmatpush.msrb.mxu1 %v467_v31  ;;  %v398_v44 = vld [vmem:[%s2687_s3 + $0x1b8] sm:$0xff]  ;;  %v411_v46 = vld [vmem:[%s2687_s3 + $0x220] sm:$0xff]  ;;  %v360_v49 = vld [vmem:[%s2687_s3 + $0x88] sm:$0xff] }
  0x36   :  { %577 = vmatpush.msrb.mxu0 %v407_v32  ;;  %613 = vmatpush.msrb.mxu2 %v372_v33  ;;  %v455_v47 = vld [vmem:[%s2687_s3 + $0x380] sm:$0xff]  ;;  %v408_v50 = vld [vmem:[%s2687_s3 + $0x208] sm:$0xff]  ;;  %v357_v53 = vld [vmem:[%s2687_s3 + $0x70] sm:$0xff] }
  0x37   :  { %633 = vmatpush.msrb.mxu3 %v420_v34  ;;  %594 = vmatpush.msrb.mxu1 %v464_v35  ;;  %v395_v48 = vld [vmem:[%s2687_s3 + $0x1a0] sm:$0xff]  ;;  %v452_v51 = vld [vmem:[%s2687_s3 + $0x368] sm:$0xff]  ;;  %v486_v54 = vld [vmem:[%s2687_s3 + $0x478] sm:$0xff] }
  0x38   :  { %578 = vmatpush.msrb.mxu0 %v404_v36  ;;  %614 = vmatpush.msrb.mxu2 %v369_v37  ;;  %v392_v52 = vld [vmem:[%s2687_s3 + $0x188] sm:$0xff]  ;;  %v405_v55 = vld [vmem:[%s2687_s3 + $0x1f0] sm:$0xff]  ;;  %v483_v57 = vld [vmem:[%s2687_s3 + $0x460] sm:$0xff] }
  0x39   :  { %634 = vmatpush.msrb.mxu3 %v417_v38  ;;  %595 = vmatpush.msrb.mxu1 %v461_v39  ;;  %v449_v56 = vld [vmem:[%s2687_s3 + $0x350] sm:$0xff]  ;;  %v354_v58 = vld [vmem:[%s2687_s3 + $0x58] sm:$0xff]  ;;  %v480_v61 = vld [vmem:[%s2687_s3 + $0x448] sm:$0xff] }
  0x3a   :  { %579 = vmatpush.msrb.mxu0 %v401_v40  ;;  %615 = vmatpush.msrb.mxu2 %v366_v41  ;;  %v402_v59 = vld [vmem:[%s2687_s3 + $0x1d8] sm:$0xff]  ;;  %v351_v62 = vld [vmem:[%s2687_s3 + $0x40] sm:$0xff]  ;;  %v477_v1 = vld [vmem:[%s2687_s3 + $0x430] sm:$0xff] }
  0x3b   :  { %635 = vmatpush.msrb.mxu3 %v414_v42  ;;  %596 = vmatpush.msrb.mxu1 %v458_v43  ;;  %v446_v60 = vld [vmem:[%s2687_s3 + $0x338] sm:$0xff]  ;;  %v399_v63 = vld [vmem:[%s2687_s3 + $0x1c0] sm:$0xff]  ;;  %v348_v2 = vld [vmem:[%s2687_s3 + $0x28] sm:$0xff]  ;;  %v36_v42 = vand.u32 2139095040, %v1568_v22 }
  0x3c   :  { %580 = vmatpush.msrb.mxu0 %v398_v44  ;;  %616 = vmatpush.msrb.mxu2 %v363_v45  ;;  %v443_v0 = vld [vmem:[%s2687_s3 + $0x320] sm:$0xff]  ;;  %v396_v3 = vld [vmem:[%s2687_s3 + $0x1a8] sm:$0xff]  ;;  %v474_v4 = vld [vmem:[%s2687_s3 + $0x418] sm:$0xff] }
  0x3d   :  { %636 = vmatpush.msrb.mxu3 %v411_v46  ;;  %597 = vmatpush.msrb.mxu1 %v455_v47  ;;  %v440_v5 = vld [vmem:[%s2687_s3 + $0x308] sm:$0xff]  ;;  %v345_v6 = vld [vmem:[%s2687_s3 + $0x10] sm:$0xff]  ;;  %v471_v8 = vld [vmem:[%s2687_s3 + $0x400] sm:$0xff]  ;;  %v37_v47 = vshrl.u32 %v36_v42, 23 }
  0x3e   :  { %581 = vmatpush.msrb.mxu0 %v395_v48  ;;  %617 = vmatpush.msrb.mxu2 %v360_v49  ;;  %v393_v7 = vld [vmem:[%s2687_s3 + $0x190] sm:$0xff]  ;;  %v468_v9 = vld [vmem:[%s2687_s3 + $0x3e8] sm:$0xff]  ;;  %v796_v10 = vld [vmem:[%s2686_s2 + $0xf8] sm:$0xff] }
  0x3f   :  { %637 = vmatpush.msrb.mxu3 %v408_v50  ;;  %598 = vmatpush.msrb.mxu1 %v452_v51  ;;  %v823_v12 = vld [vmem:[%s2686_s2 + $0x1d0] sm:$0xff]  ;;  %v794_v15 = vld [vmem:[%s2686_s2 + $0xe8] sm:$0xff]  ;;  %v821_v16 = vld [vmem:[%s2686_s2 + $0x1c0] sm:$0xff]  ;;  %v1201_v51 = vadd.s32 4294967169, %v37_v47 }
  0x40   :  { %582 = vmatpush.msrb.mxu0 %v392_v52  ;;  %618 = vmatpush.msrb.mxu2 %v357_v53  ;;  %v795_v13 = vld [vmem:[%s2686_s2 + $0xf0] sm:$0xff]  ;;  %v793_v17 = vld [vmem:[%s2686_s2 + $0xe0] sm:$0xff]  ;;  %v462_v18 = vld [vmem:[%s2687_s3 + $0x3b8] sm:$0xff]  ;;  %v191_v53 = vand.u32 2139095040, %v1563_v21 }
  0x41   :  { %638 = vmatpush.msrb.mxu3 %v405_v55  ;;  %599 = vmatpush.msrb.mxu1 %v449_v56  ;;  %v465_v14 = vld [vmem:[%s2687_s3 + $0x3d0] sm:$0xff]  ;;  %v792_v19 = vld [vmem:[%s2686_s2 + $0xd8] sm:$0xff]  ;;  %v459_v24 = vld [vmem:[%s2687_s3 + $0x3a0] sm:$0xff]  ;;  %v43_v52 = vadd.s32 1, %v1201_v51 }
  0x42   :  { %647 = vmatpush.msra.mxu0 %v486_v54  ;;  %563 = vmatmul.f32.vlgmr.msra.gmra.mxu3 %v1568_v22  ;;  %v819_v20 = vld [vmem:[%s2686_s2 + $0x1b0] sm:$0xff]  ;;  %v790_v25 = vld [vmem:[%s2686_s2 + $0xc8] sm:$0xff]  ;;  %v817_v26 = vld [vmem:[%s2686_s2 + $0x1a0] sm:$0xff]  ;;  %v192_v56 = vshrl.u32 %v191_v53, 23 }
  0x43   :  { %619 = vmatpush.msrb.mxu2 %v354_v58  ;;  %639 = vmatpush.msrb.mxu3 %v402_v59  ;;  %v791_v23 = vld [vmem:[%s2686_s2 + $0xd0] sm:$0xff]  ;;  %v789_v27 = vld [vmem:[%s2686_s2 + $0xc0] sm:$0xff]  ;;  %v456_v28 = vld [vmem:[%s2687_s3 + $0x388] sm:$0xff]  ;;  %vm44_vm0 = vcmp.gt.s32.totalorder %v43_v52, 0  ;;  %v33_v59 = vand.u32 2147483647, %v1568_v22 }
  0x44   :  { %648 = vmatpush.msra.mxu0 %v483_v57  ;;  %600 = vmatpush.msrb.mxu1 %v446_v60  ;;  %v788_v29 = vld [vmem:[%s2686_s2 + $0xb8] sm:$0xff]  ;;  %v815_v30 = vld [vmem:[%s2686_s2 + $0x190] sm:$0xff]  ;;  %v786_v33 = vld [vmem:[%s2686_s2 + $0xa8] sm:$0xff]  ;;  %v45_v54 = vsel %vm44_vm0, %v43_v52, 0  ;;  %v1204_v58 = vadd.s32 4294967169, %v192_v56 }
  0x45   :  { %620 = vmatpush.msrb.mxu2 %v351_v62  ;;  %640 = vmatpush.msrb.mxu3 %v399_v63  ;;  %v787_v31 = vld [vmem:[%s2686_s2 + $0xb0] sm:$0xff]  ;;  %v813_v34 = vld [vmem:[%s2686_s2 + $0x180] sm:$0xff]  ;;  %v450_v36 = vld [vmem:[%s2687_s3 + $0x358] sm:$0xff]  ;;  %v47_v55 = vand.u32 31, %v45_v54  ;;  %v1249_v60 = vmov 2102212464  }
  0x46   :  { %649 = vmatpush.msra.mxu0 %v480_v61  ;;  %601 = vmatpush.msrb.mxu1 %v443_v0  ;;  %v453_v32 = vld [vmem:[%s2687_s3 + $0x370] sm:$0xff]  ;;  %v785_v35 = vld [vmem:[%s2686_s2 + $0xa0] sm:$0xff]  ;;  %v784_v37 = vld [vmem:[%s2686_s2 + $0x98] sm:$0xff]  ;;  %v40_v62 = vand.u32 8388607, %v33_v59  ;;  %v1847_v63 = vshrl.u32 %v45_v54, 5 }
  0x47   :  { %621 = vmatpush.msrb.mxu2 %v348_v2  ;;  %641 = vmatpush.msrb.mxu3 %v396_v3  ;;  %v811_v38 = vld [vmem:[%s2686_s2 + $0x170] sm:$0xff]  ;;  %v447_v40 = vld [vmem:[%s2687_s3 + $0x340] sm:$0xff]  ;;  %v782_v41 = vld [vmem:[%s2686_s2 + $0x88] sm:$0xff]  ;;  %v1841_v57 = vsub.s32 32, %v47_v55  ;;  %v59_v61 = vshll.u32 %v1249_v60, %v47_v55 }
  0x48   :  { %650 = vmatpush.msra.mxu0 %v477_v1  ;;  %602 = vmatpush.msrb.mxu1 %v440_v5  ;;  %v783_v39 = vld [vmem:[%s2686_s2 + $0x90] sm:$0xff]  ;;  %v809_v43 = vld [vmem:[%s2686_s2 + $0x160] sm:$0xff]  ;;  %v444_v45 = vld [vmem:[%s2687_s3 + $0x328] sm:$0xff]  ;;  %v1251_v1 = vmov 2475754826   ;;  %vm65_vm1 = vcmp.lt.s32.totalorder %v1847_v63, 1 }
  0x49   :  { %583 = vmatmul.f32.vlgmr.msrb.gmra.mxu0 %v1563_v21  ;;  %622 = vmatpush.msrb.mxu2 %v345_v6  ;;  %v781_v44 = vld [vmem:[%s2686_s2 + $0x80] sm:$0xff]  ;;  %v780_v46 = vld [vmem:[%s2686_s2 + $0x78] sm:$0xff]  ;;  %v807_v48 = vld [vmem:[%s2686_s2 + $0x150] sm:$0xff]  ;;  %v51_v2 = vshrl.u32 %v1251_v1, %v1841_v57  ;;  %v53_v3 = vshll.u32 %v1251_v1, %v47_v55  ;;  %vm67_vm2 = vcmp.lt.s32.totalorder %v1847_v63, 3  ;;  %vm66_vm3 = vcmp.lt.s32.totalorder %v1847_v63, 2 }
  0x4a   :  { %651 = vmatpush.msra.mxu0 %v474_v4  ;;  %642 = vmatpush.msrb.mxu3 %v393_v7  ;;  %v441_v49 = vld [vmem:[%s2687_s3 + $0x310] sm:$0xff]  ;;  %v778_v50 = vld [vmem:[%s2686_s2 + $0x68] sm:$0xff]  ;;  %v1252_v4 = vmov 2131351028   ;;  %v57_v7 = vshrl.u32 %v1249_v60, %v1841_v57  ;;  %vm68_vm4 = vcmp.lt.s32.totalorder %v1847_v63, 4 }
  0x4b   :  { %603 = vmatmul.f32.vlgmr.msrb.gmra.mxu1 %v1530_v11  ;;  %623 = vmatmul.f32.vlgmr.msrb.gmra.mxu2 %v1568_v22  ;;  %v54_v5 = vshrl.u32 %v1252_v4, %v1841_v57  ;;  %v56_v6 = vshll.u32 %v1252_v4, %v47_v55 }
  0x4c   :  { %652 = vmatpush.msra.mxu0 %v471_v8  ;;  %643 = vmatmul.f32.vlgmr.msrb.gmra.mxu3 %v1563_v21  ;;  %v41_v8 = vor.u32 8388608, %v40_v62  ;;  %v1255_v62 = vmov 0  }
  0x4d   :  { %869 = vmatpush.msra.mxu3 %v796_v10  ;;  %851 = vmatpush.msra.mxu2 %v823_v12  ;;  %v1253_v10 = vmov 920167782  }
  0x4e   :  { %653 = vmatpush.msra.mxu0 %v468_v9  ;;  %829 = vmatpush.msra.mxu1 %v795_v13  ;;  %v60_v12 = vshrl.u32 %v1253_v10, %v1841_v57  ;;  %v62_v13 = vshll.u32 %v1253_v10, %v47_v55 }
  0x4f   :  { %870 = vmatpush.msra.mxu3 %v794_v15  ;;  %852 = vmatpush.msra.mxu2 %v821_v16  ;;  %v58_v15 = vor.u32 %v57_v7, %v56_v6 }
  0x50   :  { %654 = vmatpush.msra.mxu0 %v465_v14  ;;  %830 = vmatpush.msra.mxu1 %v793_v17  ;;  %v1863_v14 = vor.u32 %v54_v5, %v53_v3  ;;  %v61_v16 = vor.u32 %v60_v12, %v59_v61  ;;  %v1254_v17 = vmov 1326507024  }
  0x51   :  { %871 = vmatpush.msra.mxu3 %v792_v19  ;;  %853 = vmatpush.msra.mxu2 %v819_v20  ;;  %v1875_v20 = vshll.u32 %v41_v8, 8 }
  0x52   :  { %655 = vmatpush.msra.mxu0 %v462_v18  ;;  %831 = vmatpush.msra.mxu1 %v791_v23  ;;  %v63_v18 = vshrl.u32 %v1254_v17, %v1841_v57 }
  0x53   :  { %872 = vmatpush.msra.mxu3 %v790_v25  ;;  %854 = vmatpush.msra.mxu2 %v817_v26  ;;  %v198_v25 = vadd.s32 1, %v1204_v58 }
  0x54   :  { %656 = vmatpush.msra.mxu0 %v459_v24  ;;  %832 = vmatpush.msra.mxu1 %v789_v27  ;;  %v64_v23 = vor.u32 %v63_v18, %v62_v13  ;;  %v74_v24 = vsel %vm68_vm4, %v61_v16, 920167782  ;;  %v77_v27 = vsel %vm65_vm1, %v1863_v14, %v58_v15  ;;  %v70_v13 = vsel %vm68_vm4, %v58_v15, 2102212464 }
  0x55   :  { %873 = vmatpush.msra.mxu3 %v788_v29  ;;  %855 = vmatpush.msra.mxu2 %v815_v30  ;;  %v75_v26 = vsel %vm67_vm2, %v58_v15, %v74_v24  ;;  %vm199_vm5 = vcmp.gt.s32.totalorder %v198_v25, 0 }
  0x56   :  { %657 = vmatpush.msra.mxu0 %v456_v28  ;;  %833 = vmatpush.msra.mxu1 %v787_v31  ;;  %v82_v28 = vand.u32 65535, %v1875_v20  ;;  %v78_v30 = vsel %vm68_vm4, %v64_v23, 1326507024  ;;  %v83_v31 = vshrl.u32 %v1875_v20, 16 }
  0x57   :  { %874 = vmatpush.msra.mxu3 %v786_v33  ;;  %856 = vmatpush.msra.mxu2 %v813_v34  ;;  %v79_v33 = vsel %vm67_vm2, %v61_v16, %v78_v30 }
  0x58   :  { %658 = vmatpush.msra.mxu0 %v453_v32  ;;  %834 = vmatpush.msra.mxu1 %v785_v35  ;;  %v188_v32 = vand.u32 2147483647, %v1563_v21  ;;  %v743_v21 = vld [vmem:[%s2685_s1 + $0x250] sm:$0xff] }
  0x59   :  { %875 = vmatpush.msra.mxu3 %v784_v37  ;;  %857 = vmatpush.msra.mxu2 %v811_v38 }
  0x5a   :  { %659 = vmatpush.msra.mxu0 %v450_v36  ;;  %835 = vmatpush.msra.mxu1 %v783_v39  ;;  %v80_v36 = vsel %vm66_vm3, %v77_v27, %v79_v33 }
  0x5b   :  { %876 = vmatpush.msra.mxu3 %v782_v41  ;;  %858 = vmatpush.msra.mxu2 %v809_v43  ;;  %v84_v37 = vand.u32 65535, %v80_v36  ;;  %v85_v38 = vshrl.u32 %v80_v36, 16  ;;  %v1897_v43 = vand.u32 8388607, %v188_v32 }
  0x5c   :  { %660 = vmatpush.msra.mxu0 %v447_v40  ;;  %836 = vmatpush.msra.mxu1 %v781_v44  ;;  %v200_v40 = vsel %vm199_vm5, %v198_v25, 0 }
  0x5d   :  { %877 = vmatpush.msra.mxu3 %v780_v46  ;;  %859 = vmatpush.msra.mxu2 %v807_v48  ;;  %v86_v44 = vmul.u32 %v84_v37, %v82_v28  ;;  %v88_v46 = vmul.u32 %v84_v37, %v83_v31  ;;  %v1899_v47 = vshrl.u32 %v200_v40, 5  ;;  %v202_v51 = vand.u32 31, %v200_v40 }
  0x5e   :  { %661 = vmatpush.msra.mxu0 %v444_v45  ;;  %v87_v45 = vmul.u32 %v85_v38, %v82_v28  ;;  %v89_v52 = vmul.u32 %v85_v38, %v83_v31  ;;  %v196_v58 = vor.u32 8388608, %v1897_v43 }
  0x5f   :  { %878 = vmatpush.msra.mxu3 %v778_v50  ;;  %v92_v54 = vshll.u32 %v88_v46, 16  ;;  %vm220_vm8 = vcmp.lt.s32.totalorder %v1899_v47, 1  ;;  %v93_v24 = vshrl.u32 %v88_v46, 16  ;;  %vm223_vm11 = vcmp.lt.s32.totalorder %v1899_v47, 4 }
  0x60   :  { %662 = vmatpush.msra.mxu0 %v441_v49  ;;  %v90_v53 = vshll.u32 %v87_v45, 16  ;;  %v91_v3 = vshrl.u32 %v87_v45, 16  ;;  %vm222_vm13 = vcmp.lt.s32.totalorder %v1899_v47, 3  ;;  %vm221_vm14 = vcmp.lt.s32.totalorder %v1899_v47, 2  ;;  %v797_v47 = vld [vmem:[%s2686_s2 + $0x100] sm:$0xff] }
  0x61   :  { %663 = vmatmul.f32.vlgmr.msra.gmra.mxu0 %v1530_v11  ;;  %v1250_v11 = vmov 683565275  }
  0x62   :  { %v50_v0 = vshll.u32 %v1250_v11, %v47_v55  ;;  %vm94_vm7 = vc.u32 %v86_v44, %v90_v53  ;;  %v96_v61 = vadd.s32 %v90_v53, %v86_v44  ;;  %v49_v7 = vshrl.u32 %v1250_v11, %v1841_v57 }
  0x63   :  { %v95_v5 = vsel %vm94_vm7, 1, %v1255_v62  ;;  %v71_v57 = vsel %vm67_vm2, %v1863_v14, %v70_v13  ;;  %vm2119_vm7 = vcmp.le.f32.partialorder %v33_v59, 0.7853982  ;;  %v725_v59 = vld [vmem:[%s2685_s1 + $0x1c0] sm:$0xff] }
  0x64   :  { %v1858_v9 = vor.u32 %v51_v2, %v50_v0  ;;  %v203_v2 = vsub.s32 32, %v202_v51  ;;  %v97_v8 = vadd.s32 %v95_v5, %v89_v52  ;;  %vm98_vm10 = vc.u32 %v96_v61, %v92_v54 }
  0x65   :  { %v99_v16 = vsel %vm98_vm10, 1, %v1255_v62 }
  0x66   :  { %v73_v19 = vsel %vm65_vm1, %v1858_v9, %v1863_v14  ;;  %v69_v23 = vsel %vm65_vm1, %v49_v7, %v1858_v9  ;;  %v101_v25 = vadd.s32 %v99_v16, %v97_v8  ;;  %v206_v15 = vshrl.u32 %v1251_v1, %v203_v2 }
  0x67   :  { %v76_v29 = vsel %vm66_vm3, %v73_v19, %v75_v26  ;;  %v205_v19 = vshll.u32 %v1250_v11, %v202_v51  ;;  %v211_v9 = vshll.u32 %v1252_v4, %v202_v51  ;;  %v212_v14 = vshrl.u32 %v1249_v60, %v203_v2 }
  0x68   :  { %v106_v34 = vand.u32 65535, %v76_v29  ;;  %v107_v35 = vshrl.u32 %v76_v29, 16  ;;  %v72_v29 = vsel %vm66_vm3, %v69_v23, %v71_v57  ;;  %v102_v30 = vadd.s32 %v101_v25, %v91_v3 }
  0x69   :  { %v215_v38 = vshrl.u32 %v1253_v10, %v203_v2  ;;  %v218_v40 = vshrl.u32 %v1254_v17, %v203_v2  ;;  %v204_v45 = vshrl.u32 %v1250_v11, %v203_v2 }
  0x6a   :  { %v109_v39 = vmul.u32 %v107_v35, %v82_v28  ;;  %v108_v41 = vmul.u32 %v106_v34, %v82_v28  ;;  %v110_v42 = vmul.u32 %v106_v34, %v83_v31  ;;  %v111_v48 = vmul.u32 %v107_v35, %v83_v31 }
  0x6b   :  { %v208_v28 = vshll.u32 %v1251_v1, %v202_v51  ;;  %v209_v31 = vshrl.u32 %v1252_v4, %v203_v2  ;;  %v207_v34 = vor.u32 %v206_v15, %v205_v19  ;;  %v214_v35 = vshll.u32 %v1249_v60, %v202_v51 }
  0x6c   :  { %v112_v49 = vshll.u32 %v109_v39, 16  ;;  %v114_v50 = vshll.u32 %v110_v42, 16  ;;  %v113_v55 = vshrl.u32 %v109_v39, 16  ;;  %v115_v12 = vshrl.u32 %v110_v42, 16 }
  0x6d   :  { %v1928_v36 = vadd.s32 %v102_v30, %v93_v24  ;;  %v210_v37 = vor.u32 %v209_v31, %v208_v28  ;;  %v217_v1 = vshll.u32 %v1253_v10, %v202_v51  ;;  %v213_v39 = vor.u32 %v212_v14, %v211_v9  ;;  %v779_v9 = vld [vmem:[%s2686_s2 + $0x70] sm:$0xff] }
  0x6e   :  { %vm116_vm6 = vc.u32 %v108_v41, %v112_v49  ;;  %v118_v56 = vadd.s32 %v112_v49, %v108_v41  ;;  %v126_v4 = vmul.u32 %v1875_v20, %v72_v29  ;;  %v216_v41 = vor.u32 %v215_v38, %v214_v35  ;;  %837 = vmatpush.msra.mxu1 %v779_v9  ;;  %v759_v9 = vld [vmem:[%s2685_s1 + $0x2d0] sm:$0xff] }
  0x6f   :  { %v117_v0 = vsel %vm116_vm6, 1, %v1255_v62  ;;  %v219_v42 = vor.u32 %v218_v40, %v217_v1  ;;  %v228_v10 = vsel %vm220_vm8, %v207_v34, %v210_v37  ;;  %v232_v43 = vsel %vm220_vm8, %v210_v37, %v213_v39  ;;  %v774_v40 = vld [vmem:[%s2686_s2 + $0x48] sm:$0xff] }
  0x70   :  { %v119_v6 = vadd.s32 %v117_v0, %v111_v48  ;;  %vm120_vm9 = vc.u32 %v118_v56, %v114_v50  ;;  %v1918_v26 = vadd.s32 %v118_v56, %v114_v50  ;;  %v229_v17 = vsel %vm223_vm11, %v216_v41, 920167782 }
  0x71   :  { %v121_v18 = vsel %vm120_vm9, 1, %v1255_v62  ;;  %v1945_v20 = vshll.u32 %v196_v58, 8  ;;  %v230_v46 = vsel %vm222_vm13, %v213_v39, %v229_v17  ;;  %v233_v48 = vsel %vm223_vm11, %v219_v42, 1326507024  ;;  %v775_v42 = vld [vmem:[%s2686_s2 + $0x50] sm:$0xff]  ;;  %v772_v17 = vld [vmem:[%s2686_s2 + $0x38] sm:$0xff] }
  0x72   :  { %v123_v27 = vadd.s32 %v121_v18, %v119_v6  ;;  %vm128_vm12 = vc.u32 %v1928_v36, %v1918_v26  ;;  %v231_v50 = vsel %vm221_vm14, %v228_v10, %v230_v46  ;;  %v234_v51 = vsel %vm222_vm13, %v216_v41, %v233_v48  ;;  %v801_v10 = vld [vmem:[%s2686_s2 + $0x120] sm:$0xff]  ;;  %v799_v48 = vld [vmem:[%s2686_s2 + $0x110] sm:$0xff] }
  0x73   :  { %v237_v52 = vand.u32 65535, %v1945_v20  ;;  %v235_v53 = vsel %vm221_vm14, %v232_v43, %v234_v51  ;;  %v238_v11 = vshrl.u32 %v1945_v20, 16  ;;  %v261_v54 = vand.u32 65535, %v231_v50  ;;  %v773_v46 = vld [vmem:[%s2686_s2 + $0x40] sm:$0xff]  ;;  %v770_v51 = vld [vmem:[%s2686_s2 + $0x28] sm:$0xff] }
  0x74   :  { %v124_v33 = vadd.s32 %v123_v27, %v113_v55  ;;  %v262_v55 = vshrl.u32 %v231_v50, 16  ;;  %v239_v58 = vand.u32 65535, %v235_v53  ;;  %v240_v61 = vshrl.u32 %v235_v53, 16 }
  0x75   :  { %v225_v0 = vsel %vm223_vm11, %v213_v39, 2102212464  ;;  %v263_v2 = vmul.u32 %v261_v54, %v237_v52  ;;  %v1962_v5 = vmul.u32 %v261_v54, %v238_v11  ;;  %v224_v13 = vsel %vm220_vm8, %v204_v45, %v207_v34  ;;  %v776_v34 = vld [vmem:[%s2686_s2 + $0x58] sm:$0xff]  ;;  %v803_v39 = vld [vmem:[%s2686_s2 + $0x130] sm:$0xff] }
  0x76   :  { %v125_v63 = vadd.s32 %v124_v33, %v115_v12  ;;  %v264_v3 = vmul.u32 %v262_v55, %v237_v52  ;;  %v241_v7 = vmul.u32 %v239_v58, %v237_v52  ;;  %v242_v8 = vmul.u32 %v240_v61, %v237_v52  ;;  %v805_v33 = vld [vmem:[%s2686_s2 + $0x140] sm:$0xff]  ;;  %879 = vmatpush.msra.mxu3 %v776_v34  ;;  %v771_v54 = vld [vmem:[%s2686_s2 + $0x30] sm:$0xff] }
  0x77   :  { %v1966_v12 = vmul.u32 %v239_v58, %v238_v11  ;;  %v266_v16 = vmul.u32 %v262_v55, %v238_v11  ;;  %v269_v19 = vshll.u32 %v1962_v5, 16  ;;  %v244_v57 = vmul.u32 %v240_v61, %v238_v11  ;;  %860 = vmatpush.msra.mxu2 %v805_v33  ;;  %v824_v58 = vld [vmem:[%s2686_s2 + $0x1d8] sm:$0xff]  ;;  %v695_v33 = vld [vmem:[%s2685_s1 + $0xd0] sm:$0xff] }
  0x78   :  { %v129_v60 = vadd.s32 1, %v125_v63  ;;  %v267_v18 = vshll.u32 %v264_v3, 16  ;;  %v245_v24 = vshll.u32 %v242_v8, 16  ;;  %v226_v27 = vsel %vm222_vm13, %v210_v37, %v225_v0  ;;  %880 = vmatpush.msra.mxu3 %v774_v40 }
  0x79   :  { %v247_v25 = vshll.u32 %v1966_v12, 16  ;;  %v268_v15 = vshrl.u32 %v264_v3, 16  ;;  %v246_v14 = vshrl.u32 %v242_v8, 16  ;;  %861 = vmatpush.msra.mxu2 %v803_v39  ;;  %v227_v50 = vsel %vm221_vm14, %v224_v13, %v226_v27  ;;  %v699_v3 = vld [vmem:[%s2685_s1 + $0xf0] sm:$0xff]  ;;  %v766_v8 = vld [vmem:[%s2686_s2 + $0x8] sm:$0xff]  ;;  %v765_v27 = vld [vmem:[%s2686_s2] sm:$0xff] }
  0x7a   :  { %v130_v44 = vsel %vm128_vm12, %v129_v60, %v125_v63  ;;  %vm271_vm15 = vc.u32 %v263_v2, %v267_v18  ;;  %v273_v28 = vadd.s32 %v267_v18, %v263_v2  ;;  %vm249_vm0 = vc.u32 %v241_v7, %v245_v24  ;;  %v777_v63 = vld [vmem:[%s2686_s2 + $0x60] sm:$0xff]  ;;  %881 = vmatpush.msra.mxu3 %v772_v17 }
  0x7b   :  { %v131_v49 = vadd.s32 %v130_v44, %v126_v4  ;;  %v251_v30 = vadd.s32 %v245_v24, %v241_v7  ;;  %v272_v31 = vsel %vm271_vm15, 1, %v1255_v62  ;;  %v250_v35 = vsel %vm249_vm0, 1, %v1255_v62  ;;  %838 = vmatpush.msra.mxu1 %v777_v63  ;;  %862 = vmatpush.msra.mxu2 %v801_v10  ;;  %v769_v2 = vld [vmem:[%s2686_s2 + $0x20] sm:$0xff] }
  0x7c   :  { %v274_v37 = vadd.s32 %v272_v31, %v266_v16  ;;  %vm275_vm1 = vc.u32 %v273_v28, %v269_v19  ;;  %v252_v1 = vadd.s32 %v250_v35, %v244_v57  ;;  %v248_v4 = vshrl.u32 %v1966_v12, 16  ;;  %882 = vmatpush.msra.mxu3 %v770_v51  ;;  %v822_v12 = vld [vmem:[%s2686_s2 + $0x1c8] sm:$0xff]  ;;  %909 = vmatpush.msrb.mxu0 %v699_v3  ;;  %v697_v57 = vld [vmem:[%s2685_s1 + $0xe0] sm:$0xff]  ;;  %v731_v31 = vld [vmem:[%s2685_s1 + $0x1f0] sm:$0xff] }
  0x7d   :  { %v132_v56 = vadd.s32 536870912, %v131_v49  ;;  %vm253_vm3 = vc.u32 %v251_v30, %v247_v25  ;;  %v276_v60 = vsel %vm275_vm1, 1, %v1255_v62  ;;  %839 = vmatpush.msra.mxu1 %v775_v42  ;;  %v2026_v53 = vadd.s32 %v273_v28, %v269_v19  ;;  %863 = vmatpush.msra.mxu2 %v799_v48  ;;  %v761_v25 = vld [vmem:[%s2685_s1 + $0x2e0] sm:$0xff]  ;;  %v818_v30 = vld [vmem:[%s2686_s2 + $0x1a8] sm:$0xff]  ;;  %v755_v42 = vld [vmem:[%s2685_s1 + $0x2b0] sm:$0xff] }
  0x7e   :  { %v254_v41 = vsel %vm253_vm3, 1, %v1255_v62  ;;  %v270_v62 = vshrl.u32 %v1962_v5, 16  ;;  %v278_v45 = vadd.s32 %v276_v60, %v274_v37  ;;  %v127_v5 = vadd.s32 %v1918_v26, %v1928_v36  ;;  %v763_v26 = vld [vmem:[%s2685_s1 + $0x2f0] sm:$0xff]  ;;  %910 = vmatpush.msrb.mxu0 %v697_v57  ;;  %v816_v37 = vld [vmem:[%s2686_s2 + $0x198] sm:$0xff]  ;;  %v693_v63 = vld [vmem:[%s2685_s1 + $0xc0] sm:$0xff] }
  0x7f   :  { %v1964_v6 = vshrl.u32 %v132_v56, 30  ;;  %v256_v44 = vadd.s32 %v254_v41, %v252_v1  ;;  %840 = vmatpush.msra.mxu1 %v773_v46  ;;  %v768_v56 = vld [vmem:[%s2686_s2 + $0x18] sm:$0xff]  ;;  %v281_v7 = vmul.u32 %v1945_v20, %v227_v50  ;;  %864 = vmatpush.msra.mxu2 %v797_v47  ;;  %v767_v36 = vld [vmem:[%s2686_s2 + $0x10] sm:$0xff]  ;;  %v757_v1 = vld [vmem:[%s2685_s1 + $0x2c0] sm:$0xff]  ;;  %vm35_vm6 = vcmp.lt.s32.totalorder %v1568_v22, 0 }
  0x80   :  { %v279_v11 = vadd.s32 %v278_v45, %v268_v15  ;;  %883 = vmatpush.msra.mxu3 %v768_v56  ;;  %911 = vmatpush.msrb.mxu0 %v695_v33  ;;  %v814_v41 = vld [vmem:[%s2686_s2 + $0x188] sm:$0xff]  ;;  %v727_v60 = vld [vmem:[%s2685_s1 + $0x1d0] sm:$0xff]  ;;  %v812_v48 = vld [vmem:[%s2686_s2 + $0x178] sm:$0xff]  ;;  %vm2216_vm11 = vcmp.le.f32.partialorder %v188_v32, 0.7853982 }
  0x81   :  { %v134_v23 = vshll.u32 %v1964_v6, 30  ;;  %v257_v52 = vadd.s32 %v256_v44, %v246_v14  ;;  %841 = vmatpush.msra.mxu1 %v771_v54  ;;  %891 = vmatpush.msrb.mxu2 %v824_v58  ;;  %v753_v50 = vld [vmem:[%s2685_s1 + $0x2a0] sm:$0xff]  ;;  %v157_v3 = vsub.s32 4, %v1964_v6 }
  0x82   :  { %v280_v0 = vadd.s32 %v279_v11, %v270_v62  ;;  %884 = vmatpush.msra.mxu3 %v766_v8  ;;  %912 = vmatpush.msrb.mxu0 %v693_v63  ;;  %v808_v8 = vld [vmem:[%s2686_s2 + $0x158] sm:$0xff]  ;;  %v685_v57 = vld [vmem:[%s2685_s1 + $0x80] sm:$0xff] }
  0x83   :  { %v1975_v29 = vsub.s32 %v131_v49, %v134_v23  ;;  %v2040_v61 = vadd.s32 %v257_v52, %v248_v4  ;;  %842 = vmatpush.msra.mxu1 %v769_v2  ;;  %v820_v23 = vld [vmem:[%s2686_s2 + $0x1b8] sm:$0xff]  ;;  %892 = vmatpush.msrb.mxu2 %v822_v12  ;;  %v689_v2 = vld [vmem:[%s2685_s1 + $0xa0] sm:$0xff] }
  0x84   :  { %v284_v16 = vadd.s32 1, %v280_v0  ;;  %949 = vmatpush.msrb.mxu3 %v763_v26  ;;  %v687_v26 = vld [vmem:[%s2685_s1 + $0x90] sm:$0xff] }
  0x85   :  { %vm136_vm2 = vcmp.lt.s32.totalorder %v1975_v29, 0  ;;  %v137_v38 = vsub.s32 0, %v1975_v29  ;;  %vm283_vm5 = vc.u32 %v2040_v61, %v2026_v53  ;;  %843 = vmatpush.msra.mxu1 %v767_v36  ;;  %893 = vmatpush.msrb.mxu2 %v820_v23  ;;  %v721_v36 = vld [vmem:[%s2685_s1 + $0x1a0] sm:$0xff]  ;;  %v806_v23 = vld [vmem:[%s2686_s2 + $0x148] sm:$0xff] }
  0x86   :  { %v285_v24 = vsel %vm283_vm5, %v284_v16, %v280_v0  ;;  %950 = vmatpush.msrb.mxu3 %v761_v25  ;;  %v810_v0 = vld [vmem:[%s2686_s2 + $0x168] sm:$0xff] }
  0x87   :  { %v138_v43 = vsel %vm136_vm2, %v137_v38, %v1975_v29  ;;  %844 = vmatpush.msra.mxu1 %v765_v27  ;;  %v729_v38 = vld [vmem:[%s2685_s1 + $0x1e0] sm:$0xff]  ;;  %894 = vmatpush.msrb.mxu2 %v818_v30 }
  0x88   :  { %v139_v49 = vclz %v138_v43  ;;  %951 = vmatpush.msrb.mxu3 %v759_v9 }
  0x89   :  { %929 = vmatpush.msrb.mxu1 %v731_v31  ;;  %895 = vmatpush.msrb.mxu2 %v816_v37  ;;  %v717_v31 = vld [vmem:[%s2685_s1 + $0x180] sm:$0xff] }
  0x8a   :  { %v1202_v55 = vadd.s32 4294967294, %v139_v49  ;;  %952 = vmatpush.msrb.mxu3 %v757_v1  ;;  %v691_v49 = vld [vmem:[%s2685_s1 + $0xb0] sm:$0xff] }
  0x8b   :  { %930 = vmatpush.msrb.mxu1 %v729_v38  ;;  %896 = vmatpush.msrb.mxu2 %v814_v41  ;;  %v745_v38 = vld [vmem:[%s2685_s1 + $0x260] sm:$0xff] }
  0x8c   :  { %vm1203_vm4 = vcmp.lt.s32.totalorder %v1202_v55, 0  ;;  %953 = vmatpush.msrb.mxu3 %v755_v42  ;;  %913 = vmatpush.msrb.mxu0 %v691_v49 }
  0x8d   :  { %v142_v13 = vsel %vm1203_vm4, 0, %v1202_v55  ;;  %931 = vmatpush.msrb.mxu1 %v727_v60  ;;  %897 = vmatpush.msrb.mxu2 %v812_v48  ;;  %vm825_vm4 = vcmask 916480  }
  0x8e   :  { %v143_v20 = vsub.s32 32, %v142_v13  ;;  %v144_v18 = vshll.u32 %v1975_v29, %v142_v13  ;;  %v147_v19 = vsub.s32 4294967266, %v142_v13  ;;  %v286_v29 = vadd.s32 %v285_v24, %v281_v7  ;;  %954 = vmatpush.msrb.mxu3 %v753_v50  ;;  %914 = vmatpush.msrb.mxu0 %v689_v2  ;;  %v751_v7 = vld [vmem:[%s2685_s1 + $0x290] sm:$0xff]  ;;  %v741_v2 = vld [vmem:[%s2685_s1 + $0x240] sm:$0xff] }
  0x8f   :  { %932 = vmatpush.msrb.mxu1 %v725_v59  ;;  %898 = vmatpush.msrb.mxu2 %v810_v0  ;;  %v282_v24 = vadd.s32 %v2026_v53, %v2040_v61  ;;  %v804_v53 = vld [vmem:[%s2686_s2 + $0x138] sm:$0xff]  ;;  %v683_v61 = vld [vmem:[%s2685_s1 + $0x70] sm:$0xff]  ;;  %v2211_v59 = vld [vmem:[%s2684_s0 + $0x8] sm:$0xff] }
  0x90   :  { %v145_v15 = vshrl.u32 %v127_v5, %v143_v20  ;;  %v148_v28 = vadd.s32 127, %v147_v19  ;;  %v287_v35 = vadd.s32 536870912, %v286_v29  ;;  %v723_v5 = vld [vmem:[%s2685_s1 + $0x1b0] sm:$0xff]  ;;  %955 = vmatpush.msrb.mxu3 %v751_v7  ;;  %915 = vmatpush.msrb.mxu0 %v687_v26  ;;  %v749_v19 = vld [vmem:[%s2685_s1 + $0x280] sm:$0xff]  ;;  %vm190_vm10 = vcmp.lt.s32.totalorder %v2211_v59, 0 }
  0x91   :  { %933 = vmatpush.msrb.mxu1 %v723_v5  ;;  %899 = vmatpush.msrb.mxu2 %v808_v8  ;;  %v798_v5 = vld [vmem:[%s2686_s2 + $0x108] sm:$0xff]  ;;  %v677_v7 = vld [vmem:[%s2685_s1 + $0x40] sm:$0xff]  ;;  %v711_v8 = vld [vmem:[%s2685_s1 + $0x150] sm:$0xff]  ;;  %vm331_vm3 = vweird.f32 %v2211_v59 }
  0x92   :  { %v146_v34 = vor.u32 %v145_v15, %v144_v18  ;;  %v149_v14 = vshll.u32 %v148_v28, 23  ;;  %v2102_v4 = vshrl.u32 %v287_v35, 30  ;;  %956 = vmatpush.msrb.mxu3 %v749_v19  ;;  %v719_v28 = vld [vmem:[%s2685_s1 + $0x190] sm:$0xff]  ;;  %916 = vmatpush.msrb.mxu0 %v685_v57  ;;  %v158_v35 = vsel %vm35_vm6, %v157_v3, %v1964_v6  ;;  %v709_v19 = vld [vmem:[%s2685_s1 + $0x140] sm:$0xff] }
  0x93   :  { %934 = vmatpush.msrb.mxu1 %v721_v36  ;;  %900 = vmatpush.msrb.mxu2 %v806_v23  ;;  %v160_v41 = vsel %vm2119_vm7, 0, %v158_v35  ;;  %v737_v23 = vld [vmem:[%s2685_s1 + $0x220] sm:$0xff] }
  0x94   :  { %v150_v39 = vor.u32 4788187, %v149_v14  ;;  %v153_v40 = vcvt.s32.f32 %v146_v34  ;;  %v289_v17 = vshll.u32 %v2102_v4, 30  ;;  %917 = vmatpush.msrb.mxu0 %v683_v61  ;;  %v735_v61 = vld [vmem:[%s2685_s1 + $0x210] sm:$0xff]  ;;  %v733_v35 = vld [vmem:[%s2685_s1 + $0x200] sm:$0xff] }
  0x95   :  { %935 = vmatpush.msrb.mxu1 %v719_v28  ;;  %901 = vmatpush.msrb.mxu2 %v804_v53  ;;  %v707_v53 = vld [vmem:[%s2685_s1 + $0x130] sm:$0xff] }
  0x96   :  { %v151_v10 = vand.u32 2147483647, %v150_v39  ;;  %v2114_v44 = vsub.s32 %v286_v29, %v289_v17  ;;  %v747_v29 = vld [vmem:[%s2685_s1 + $0x270] sm:$0xff] }
  0x97   :  { %957 = vmatpush.msrb.mxu3 %v747_v29  ;;  %936 = vmatpush.msrb.mxu1 %v717_v31 }
  0x98   :  { %v154_v43 = vmul.f32 %v153_v40, %v151_v10  ;;  %vm291_vm8 = vcmp.lt.s32.totalorder %v2114_v44, 0  ;;  %v292_v46 = vsub.s32 0, %v2114_v44 }
  0x99   :  { %958 = vmatpush.msrb.mxu3 %v745_v38 }
  0x9a   :  { %v155_v45 = vxor.u32 2147483648, %v154_v43  ;;  %v293_v52 = vsel %vm291_vm8, %v292_v46, %v2114_v44 }
  0x9b   :  { %v294_v54 = vclz %v293_v52  ;;  %v681_v52 = vld [vmem:[%s2685_s1 + $0x60] sm:$0xff]  ;;  %959 = vmatpush.msrb.mxu3 %v743_v21  ;;  %v724_v21 = vld [vmem:[%s2685_s1 + $0x1b8] sm:$0xff] }
  0x9c   :  { %v156_v51 = vsel %vm35_vm6, %v155_v45, %v154_v43  ;;  %v177_v43 = vadd.s32 3, %v160_v41  ;;  %918 = vmatpush.msrb.mxu0 %v681_v52  ;;  %v669_v41 = vld [vmem:[%s2685_s1] sm:$0xff]  ;;  %v726_v52 = vld [vmem:[%s2685_s1 + $0x1c8] sm:$0xff] }
  0x9d   :  { %v2143_v11 = vsel %vm2119_vm7, %v1568_v22, %v156_v51  ;;  %v1205_v55 = vadd.s32 4294967294, %v294_v54  ;;  %v802_v51 = vld [vmem:[%s2686_s2 + $0x128] sm:$0xff]  ;;  %960 = vmatpush.msrb.mxu3 %v741_v2 }
  0x9e   :  { %v161_v47 = vmul.f32 %v2143_v11, %v2143_v11  ;;  %v178_v49 = vand.u32 3, %v177_v43  ;;  %902 = vmatpush.msrb.mxu2 %v802_v51  ;;  %v754_v2 = vld [vmem:[%s2685_s1 + $0x2a8] sm:$0xff] }
  0x9f   :  { %vm1206_vm9 = vcmp.lt.s32.totalorder %v1205_v55, 0 }
  0xa0   :  { %v162_v56 = vmul.f32 -0.001358992, %v161_v47  ;;  %v169_v58 = vmul.f32 -0.00019511016, %v161_v47  ;;  %v297_v30 = vsel %vm1206_vm9, 0, %v1205_v55  ;;  %v800_v55 = vld [vmem:[%s2686_s2 + $0x118] sm:$0xff] }
  0xa1   :  { %v298_v9 = vsub.s32 32, %v297_v30  ;;  %v299_v33 = vshll.u32 %v2114_v44, %v297_v30  ;;  %v302_v34 = vsub.s32 4294967266, %v297_v30  ;;  %vm180_vm12 = vcmp.eq.s32.totalorder %v178_v49, 0  ;;  %903 = vmatpush.msrb.mxu2 %v800_v55  ;;  %v673_v30 = vld [vmem:[%s2685_s1 + $0x20] sm:$0xff]  ;;  %v722_v55 = vld [vmem:[%s2685_s1 + $0x1a8] sm:$0xff]  ;;  %s1256_s2 = smov [#allocation2]  }
  0xa2   :  { %v163_v13 = vadd.f32 0.041655596, %v162_v56  ;;  %v170_v16 = vadd.f32 0.008332121, %v169_v58  ;;  %v679_v56 = vld [vmem:[%s2685_s1 + $0x50] sm:$0xff]  ;;  %v713_v58 = vld [vmem:[%s2685_s1 + $0x160] sm:$0xff] }
  0xa3   :  { %v300_v63 = vshrl.u32 %v282_v24, %v298_v9  ;;  %v303_v39 = vadd.s32 127, %v302_v34  ;;  %vm183_vm13 = vcmp.eq.s32.totalorder %v178_v49, 2  ;;  %919 = vmatpush.msrb.mxu0 %v679_v56  ;;  %vm179_vm14 = vcmp.lt.s32.totalorder %v178_v49, 2  ;;  %904 = vmatpush.msrb.mxu2 %v798_v5  ;;  %v705_v34 = vld [vmem:[%s2685_s1 + $0x120] sm:$0xff]  ;;  %v762_v49 = vld [vmem:[%s2685_s1 + $0x2e8] sm:$0xff]  ;;  %v756_v56 = vld [vmem:[%s2685_s1 + $0x2b8] sm:$0xff] }
  0xa4   :  { %v164_v27 = vmul.f32 %v163_v13, %v161_v47  ;;  %v171_v15 = vmul.f32 %v170_v16, %v161_v47  ;;  %v739_v13 = vld [vmem:[%s2685_s1 + $0x230] sm:$0xff]  ;;  %s1190_s24 = sshll.u32 %s1256_s2, 4  ;;  %s1191_s24 = int_to_ptr.vmem [resolvable:$true] %s1190_s24 }
  0xa5   :  { %v301_v22 = vor.u32 %v300_v63, %v299_v33  ;;  %v304_v6 = vshll.u32 %v303_v39, 23  ;;  %920 = vmatpush.msrb.mxu0 %v677_v7  ;;  %961 = vmatpush.msrb.mxu3 %v739_v13  ;;  %v752_v13 = vld [vmem:[%s2685_s1 + $0x298] sm:$0xff] }
  0xa6   :  { %v172_v37 = vadd.f32 -0.16666654, %v171_v15  ;;  %v165_v1 = vadd.f32 -0.4999988, %v164_v27  ;;  %v2280_v15 = vld [vmem:[%s2684_s0] sm:$0xff] }
  0xa7   :  { %v305_v10 = vor.u32 4788187, %v304_v6  ;;  %v308_v17 = vcvt.s32.f32 %v301_v22  ;;  %vm176_vm15 = vweird.f32 %v2280_v15  ;;  %962 = vmatpush.msrb.mxu3 %v737_v23  ;;  %v703_v22 = vld [vmem:[%s2685_s1 + $0x110] sm:$0xff] }
  0xa8   :  { %v173_v40 = vmul.f32 %v172_v37, %v161_v47  ;;  %v166_v60 = vmul.f32 %v165_v1, %v161_v47 }
  0xa9   :  { %v306_v44 = vand.u32 2147483647, %v305_v10  ;;  %963 = vmatpush.msrb.mxu3 %v735_v61  ;;  %v698_v61 = vld [vmem:[%s2685_s1 + $0xe8] sm:$0xff] }
  0xaa   :  { %v174_v42 = vadd.f32 1.0, %v173_v40  ;;  %v167_v45 = vadd.f32 1.0, %v166_v60  ;;  %v732_v60 = vld [vmem:[%s2685_s1 + $0x1f8] sm:$0xff] }
  0xab   :  { %v309_v48 = vmul.f32 %v308_v17, %v306_v44  ;;  %964 = vmatpush.msrb.mxu3 %v733_v35  ;;  %v701_v17 = vld [vmem:[%s2685_s1 + $0x100] sm:$0xff]  ;;  %v704_v35 = vld [vmem:[%s2685_s1 + $0x118] sm:$0xff] }
  0xac   :  { %v175_v46 = vmul.f32 %v174_v42, %v2143_v11  ;;  %v715_v11 = vld [vmem:[%s2685_s1 + $0x170] sm:$0xff]  ;;  %v184_v54 = vxor.u32 2147483648, %v167_v45 }
  0xad   :  { %v524_v12 = vpop.f32.mrf.mxu1  ;;  %v310_v50 = vxor.u32 2147483648, %v309_v48  ;;  %937 = vmatpush.msrb.mxu1 %v715_v11  ;;  %v760_v11 = vld [vmem:[%s2685_s1 + $0x2d8] sm:$0xff] }
  0xae   :  { %v504_v20 = vpop.f32.mrf.mxu0  ;;  %v544_v18 = vpop.f32.mrf.mxu2  ;;  %v181_v32 = vxor.u32 2147483648, %v175_v46  ;;  %v185_v26 = vsel %vm183_vm13, %v184_v54, %v175_v46  ;;  %v764_v46 = vld [vmem:[%s2685_s1 + $0x2f8] sm:$0xff] }
  0xaf   :  { %v525_v25 = vadd.f32 %v524_v12, %v504_v20  ;;  %v311_v47 = vsel %vm190_vm10, %v310_v50, %v309_v48  ;;  %938 = vmatpush.msrb.mxu1 %v713_v58  ;;  %v312_v12 = vsub.s32 4, %v2102_v4  ;;  %v728_v48 = vld [vmem:[%s2685_s1 + $0x1d8] sm:$0xff]  ;;  %v2356_v58 = vld [vmem:[%s2684_s0 + $0x10] sm:$0xff] }
  0xb0   :  { %v2246_v0 = vsel %vm2216_vm11, %v2211_v59, %v311_v47  ;;  %v182_v16 = vsel %vm180_vm12, %v167_v45, %v181_v32  ;;  %v730_v45 = vld [vmem:[%s2685_s1 + $0x1e8] sm:$0xff] }
  0xb1   :  { %v2197_v14 = vadd.f32 %v544_v18, %v525_v25  ;;  %v316_v3 = vmul.f32 %v2246_v0, %v2246_v0  ;;  %939 = vmatpush.msrb.mxu1 %v711_v8  ;;  %v675_v18 = vld [vmem:[%s2685_s1 + $0x30] sm:$0xff]  ;;  %v186_v28 = vsel %vm179_vm14, %v182_v16, %v185_v26  ;;  %v313_v29 = vsel %vm190_vm10, %v312_v12, %v2102_v4  ;;  %v758_v32 = vld [vmem:[%s2685_s1 + $0x2c8] sm:$0xff] }
  0xb2   :  { %921 = vmatpush.msrb.mxu0 %v675_v18  ;;  %v671_v4 = vld [vmem:[%s2685_s1 + $0x10] sm:$0xff]  ;;  %v187_v37 = vsel %vm176_vm15, nan, %v186_v28  ;;  %v315_v40 = vsel %vm2216_vm11, 0, %v313_v29  ;;  %v718_v12 = vld [vmem:[%s2685_s1 + $0x188] sm:$0xff]  ;;  %v700_v29 = vld [vmem:[%s2685_s1 + $0xf8] sm:$0xff] }
  0xb3   :  { %v317_v36 = vmul.f32 -0.001358992, %v316_v3  ;;  %v324_v20 = vmul.f32 -0.00019511016, %v316_v3  ;;  %940 = vmatpush.msrb.mxu1 %v709_v19  ;;  %v332_v44 = vadd.s32 3, %v315_v40  ;;  %v714_v18 = vld [vmem:[%s2685_s1 + $0x168] sm:$0xff] }
  0xb4   :  { %922 = vmatpush.msrb.mxu0 %v673_v30  ;;  %v748_v19 = vld [vmem:[%s2685_s1 + $0x278] sm:$0xff]  ;;  %v710_v30 = vld [vmem:[%s2685_s1 + $0x148] sm:$0xff] }
  0xb5   :  { %v318_v57 = vadd.f32 0.041655596, %v317_v36  ;;  %v325_v24 = vadd.f32 0.008332121, %v324_v20  ;;  %941 = vmatpush.msrb.mxu1 %v707_v53  ;;  %v333_v51 = vand.u32 3, %v332_v44  ;;  %v716_v36 = vld [vmem:[%s2685_s1 + $0x178] sm:$0xff] }
  0xb6   :  { %923 = vmatpush.msrb.mxu0 %v671_v4  ;;  %v750_v20 = vld [vmem:[%s2685_s1 + $0x288] sm:$0xff]  ;;  %v744_v53 = vld [vmem:[%s2685_s1 + $0x258] sm:$0xff] }
  0xb7   :  { %v319_v9 = vmul.f32 %v318_v57, %v316_v3  ;;  %v326_v33 = vmul.f32 %v325_v24, %v316_v3  ;;  %942 = vmatpush.msrb.mxu1 %v705_v34  ;;  %vm335_vm0 = vcmp.eq.s32.totalorder %v333_v51, 0  ;;  %vm338_vm1 = vcmp.eq.s32.totalorder %v333_v51, 2  ;;  %v696_v4 = vld [vmem:[%s2685_s1 + $0xd8] sm:$0xff]  ;;  %v678_v44 = vld [vmem:[%s2685_s1 + $0x48] sm:$0xff] }
  0xb8   :  { %924 = vmatpush.msrb.mxu0 %v669_v41  ;;  %vm334_vm2 = vcmp.lt.s32.totalorder %v333_v51, 2  ;;  %v740_v34 = vld [vmem:[%s2685_s1 + $0x238] sm:$0xff]  ;;  %v1041_v51 = vld [vmem:[%s2688_s4 + $0x50] sm:$0xff] }
  0xb9   :  { %v320_v1 = vadd.f32 -0.4999988, %v319_v9  ;;  %v327_v63 = vadd.f32 -0.16666654, %v326_v33  ;;  %943 = vmatpush.msrb.mxu1 %v703_v22  ;;  %925 = vmatmul.f32.vlgmr.msrb.gmra.mxu0 %v2280_v15  ;;  %v742_v9 = vld [vmem:[%s2685_s1 + $0x248] sm:$0xff]  ;;  %v692_v40 = vld [vmem:[%s2685_s1 + $0xb8] sm:$0xff] }
  0xba   :  { %989 = vmatpush.msra.mxu0 %v732_v60  ;;  %v706_v33 = vld [vmem:[%s2685_s1 + $0x128] sm:$0xff]  ;;  %v736_v41 = vld [vmem:[%s2685_s1 + $0x218] sm:$0xff] }
  0xbb   :  { %v328_v6 = vmul.f32 %v327_v63, %v316_v3  ;;  %v321_v10 = vmul.f32 %v320_v1, %v316_v3  ;;  %944 = vmatpush.msrb.mxu1 %v701_v17  ;;  %v694_v1 = vld [vmem:[%s2685_s1 + $0xc8] sm:$0xff]  ;;  %v684_v17 = vld [vmem:[%s2685_s1 + $0x78] sm:$0xff] }
  0xbc   :  { %990 = vmatpush.msra.mxu0 %v730_v45  ;;  %v738_v63 = vld [vmem:[%s2685_s1 + $0x228] sm:$0xff]  ;;  %v676_v45 = vld [vmem:[%s2685_s1 + $0x38] sm:$0xff] }
  0xbd   :  { %v329_v43 = vadd.f32 1.0, %v328_v6  ;;  %v322_v62 = vadd.f32 1.0, %v321_v10  ;;  %v1044_v22 = vld [vmem:[%s2688_s4 + $0x68] sm:$0xff] }
  0xbe   :  { %991 = vmatpush.msra.mxu0 %v728_v48  ;;  %v690_v6 = vld [vmem:[%s2685_s1 + $0xa8] sm:$0xff]  ;;  %v672_v48 = vld [vmem:[%s2685_s1 + $0x18] sm:$0xff] }
  0xbf   :  { %v330_v50 = vmul.f32 %v329_v43, %v2246_v0  ;;  %v339_v47 = vxor.u32 2147483648, %v322_v62  ;;  %v720_v0 = vld [vmem:[%s2685_s1 + $0x198] sm:$0xff]  ;;  %v734_v60 = vld [vmem:[%s2685_s1 + $0x208] sm:$0xff] }
  0xc0   :  { %992 = vmatpush.msra.mxu0 %v726_v52  ;;  %v686_v10 = vld [vmem:[%s2685_s1 + $0x88] sm:$0xff] }
  0xc1   :  { %v336_v54 = vxor.u32 2147483648, %v330_v50  ;;  %v340_v8 = vsel %vm338_vm1, %v339_v47, %v330_v50  ;;  %v682_v43 = vld [vmem:[%s2685_s1 + $0x68] sm:$0xff]  ;;  %v1042_v50 = vld [vmem:[%s2688_s4 + $0x58] sm:$0xff] }
  0xc2   :  { %993 = vmatpush.msra.mxu0 %v724_v21  ;;  %v1040_v52 = vld [vmem:[%s2688_s4 + $0x48] sm:$0xff]  ;;  %v1037_v21 = vld [vmem:[%s2688_s4 + $0x30] sm:$0xff]  ;;  %v1034_v47 = vld [vmem:[%s2688_s4 + $0x18] sm:$0xff] }
  0xc3   :  { %v337_v7 = vsel %vm335_vm0, %v322_v62, %v336_v54  ;;  %v1043_v62 = vld [vmem:[%s2688_s4 + $0x60] sm:$0xff] }
  0xc4   :  { %994 = vmatpush.msra.mxu0 %v722_v55  ;;  %v341_v26 = vsel %vm334_vm2, %v337_v7, %v340_v8  ;;  %v1035_v54 = vld [vmem:[%s2688_s4 + $0x20] sm:$0xff]  ;;  %v1033_v55 = vld [vmem:[%s2688_s4 + $0x10] sm:$0xff]  ;;  %v1058_v7 = vld [vmem:[%s2688_s4 + $0xd8] sm:$0xff] }
  0xc5   :  { %v564_v25 = vpop.f32.mrf.mxu3  ;;  %v342_v23 = vsel %vm331_vm3, nan, %v341_v26  ;;  %v1057_v8 = vld [vmem:[%s2688_s4 + $0xd0] sm:$0xff] }
  0xc6   :  { %v584_v27 = vpop.f32.mrf.mxu0  ;;  %995 = vmatpush.msra.mxu0 %v720_v0  ;;  %v1031_v0 = vld [vmem:[%s2688_s4] sm:$0xff]  ;;  %v1053_v26 = vld [vmem:[%s2688_s4 + $0xb0] sm:$0xff] }
  0xc7   :  { %v585_v31 = vadd.f32 %v584_v27, %v564_v25  ;;  %v712_v25 = vld [vmem:[%s2685_s1 + $0x158] sm:$0xff]  ;;  %v746_v27 = vld [vmem:[%s2685_s1 + $0x268] sm:$0xff] }
  0xc8   :  { %v604_v38 = vpop.f32.mrf.mxu1  ;;  %996 = vmatpush.msra.mxu0 %v718_v12  ;;  %v1056_v12 = vld [vmem:[%s2688_s4 + $0xc8] sm:$0xff] }
  0xc9   :  { %v605_v39 = vadd.f32 %v604_v38, %v585_v31  ;;  %v708_v31 = vld [vmem:[%s2685_s1 + $0x138] sm:$0xff]  ;;  %v1045_v38 = vld [vmem:[%s2688_s4 + $0x70] sm:$0xff] }
  0xca   :  { %997 = vmatpush.msra.mxu0 %v716_v36 }
  0xcb   :  { %v667_v42 = vmul.f32 %v605_v39, %v187_v37  ;;  %v1046_v37 = vld [vmem:[%s2688_s4 + $0x78] sm:$0xff]  ;;  %v702_v39 = vld [vmem:[%s2685_s1 + $0x108] sm:$0xff] }
  0xcc   :  { %998 = vmatpush.msra.mxu0 %v714_v18 }
  0xcd   :  { %845 = vmatmul.f32.vlgmr.msra.gmra.mxu1 %v667_v42  ;;  %885 = vmatmul.f32.vlgmr.msra.gmra.mxu3 %v667_v42  ;;  %v688_v42 = vld [vmem:[%s2685_s1 + $0x98] sm:$0xff] }
  0xce   :  { %1009 = vmatpush.msra.mxu1 %v764_v46  ;;  %v624_v3 = vpop.f32.mrf.mxu2  ;;  %999 = vmatpush.msra.mxu0 %v712_v25  ;;  %v674_v46 = vld [vmem:[%s2685_s1 + $0x28] sm:$0xff]  ;;  %v1050_v25 = vld [vmem:[%s2688_s4 + $0x98] sm:$0xff] }
  0xcf   :  { %v644_v5 = vpop.f32.mrf.mxu3  ;;  %1065 = vmatpush.msra.mxu3 %v1046_v37 }
  0xd0   :  { %1010 = vmatpush.msra.mxu1 %v762_v49  ;;  %v645_v16 = vadd.f32 %v644_v5, %v624_v3  ;;  %1000 = vmatpush.msra.mxu0 %v710_v30  ;;  %v670_v49 = vld [vmem:[%s2685_s1 + $0x8] sm:$0xff]  ;;  %v1059_v5 = vld [vmem:[%s2688_s4 + $0xe0] sm:$0xff] }
  0xd1   :  { %1066 = vmatpush.msra.mxu3 %v1045_v38  ;;  %v1060_v3 = vld [vmem:[%s2688_s4 + $0xe8] sm:$0xff] }
  0xd2   :  { %1011 = vmatpush.msra.mxu1 %v760_v11  ;;  %1001 = vmatpush.msra.mxu0 %v708_v31  ;;  %v1038_v11 = vld [vmem:[%s2688_s4 + $0x38] sm:$0xff] }
  0xd3   :  { %1067 = vmatpush.msra.mxu3 %v1044_v22  ;;  %v1120_v22 = vld [vmem:[%s2689_s5 + $0x70] sm:$0xff] }
  0xd4   :  { %1012 = vmatpush.msra.mxu1 %v758_v32  ;;  %1002 = vmatpush.msra.mxu0 %v706_v33  ;;  %v1036_v32 = vld [vmem:[%s2688_s4 + $0x28] sm:$0xff] }
  0xd5   :  { %965 = vmatmul.f32.vlgmr.msrb.gmra.mxu3 %v2356_v58  ;;  %945 = vmatmul.f32.vlgmr.msrb.gmra.mxu1 %v2211_v59 }
  0xd6   :  { %1013 = vmatpush.msra.mxu1 %v756_v56  ;;  %1003 = vmatpush.msra.mxu0 %v704_v35  ;;  %v1032_v56 = vld [vmem:[%s2688_s4 + $0x8] sm:$0xff] }
  0xd7   :  { %1068 = vmatpush.msra.mxu3 %v1043_v62  ;;  %v1107_v62 = vld [vmem:[%s2689_s5 + $0x8] sm:$0xff] }
  0xd8   :  { %1014 = vmatpush.msra.mxu1 %v754_v2  ;;  %1004 = vmatpush.msra.mxu0 %v702_v39  ;;  %v1061_v2 = vld [vmem:[%s2688_s4 + $0xf0] sm:$0xff] }
  0xd9   :  { %1005 = vmatmul.f32.vlgmr.msra.gmra.mxu0 %v2211_v59  ;;  %v680_v59 = vld [vmem:[%s2685_s1 + $0x58] sm:$0xff]  ;;  %1069 = vmatpush.msra.mxu3 %v1042_v50  ;;  %v1106_v50 = vld [vmem:[%s2689_s5] sm:$0xff] }
  0xda   :  { %1015 = vmatpush.msra.mxu1 %v752_v13  ;;  %v1055_v13 = vld [vmem:[%s2688_s4 + $0xc0] sm:$0xff] }
  0xdb   :  { %1070 = vmatpush.msra.mxu3 %v1041_v51  ;;  %v1160_v51 = vld [vmem:[%s2690_s6 + $0x78] sm:$0xff] }
  0xdc   :  { %1016 = vmatpush.msra.mxu1 %v750_v20  ;;  %v1052_v20 = vld [vmem:[%s2688_s4 + $0xa8] sm:$0xff] }
  0xdd   :  { %1071 = vmatpush.msra.mxu3 %v1040_v52  ;;  %v1159_v52 = vld [vmem:[%s2690_s6 + $0x70] sm:$0xff] }
  0xde   :  { %v664_v57 = vpop.f32.mrf.mxu0  ;;  %1017 = vmatpush.msra.mxu1 %v748_v19  ;;  %v1051_v19 = vld [vmem:[%s2688_s4 + $0xa0] sm:$0xff] }
  0xdf   :  { %v665_v24 = vadd.f32 %v664_v57, %v645_v16  ;;  %v1054_v16 = vld [vmem:[%s2688_s4 + $0xb8] sm:$0xff] }
  0xe0   :  { %1018 = vmatpush.msra.mxu1 %v746_v27 }
  0xe1   :  { %v668_v28 = vmul.f32 %v665_v24, %v342_v23 }
  0xe2   :  { %1019 = vmatpush.msra.mxu1 %v744_v53 }
  0xe3   :  { %1207 = vmatmul.msk.f32.vlgmr.msra.gmra.mxu2 %vm825_vm4, %v668_v28 }
  0xe4   :  { %969 = vmatpush.msra.mxu2 %v700_v29  ;;  %1020 = vmatpush.msra.mxu1 %v742_v9  ;;  %v1049_v29 = vld [vmem:[%s2688_s4 + $0x90] sm:$0xff]  ;;  %v1047_v9 = vld [vmem:[%s2688_s4 + $0x80] sm:$0xff] }
  0xe6   :  { %970 = vmatpush.msra.mxu2 %v698_v61  ;;  %1021 = vmatpush.msra.mxu1 %v740_v34  ;;  %v1048_v61 = vld [vmem:[%s2688_s4 + $0x88] sm:$0xff] }
  0xe8   :  { %971 = vmatpush.msra.mxu2 %v696_v4  ;;  %1022 = vmatpush.msra.mxu1 %v738_v63 }
  0xea   :  { %972 = vmatpush.msra.mxu2 %v694_v1  ;;  %1023 = vmatpush.msra.mxu1 %v736_v41  ;;  %v1121_v41 = vld [vmem:[%s2689_s5 + $0x78] sm:$0xff] }
  0xeb   :  { %1208 = vmatmul.msk.f32.vlgmr.msrb.gmra.mxu2 %vm825_vm4, %v668_v28  ;;  %1124 = vmatpush.msrb.mxu0 %v1121_v41 }
  0xec   :  { %973 = vmatpush.msra.mxu2 %v692_v40  ;;  %1024 = vmatpush.msra.mxu1 %v734_v60  ;;  %v1118_v60 = vld [vmem:[%s2689_s5 + $0x60] sm:$0xff] }
  0xed   :  { %1025 = vmatmul.f32.vlgmr.msra.gmra.mxu1 %v2356_v58  ;;  %v1062_v58 = vld [vmem:[%s2688_s4 + $0xf8] sm:$0xff]  ;;  %1125 = vmatpush.msrb.mxu0 %v1120_v22 }
  0xee   :  { %974 = vmatpush.msra.mxu2 %v690_v6  ;;  %v1119_v6 = vld [vmem:[%s2689_s5 + $0x68] sm:$0xff]  ;;  %1163 = vmatpush.msrb.mxu1 %v1160_v51 }
  0xef   :  { %1126 = vmatpush.msrb.mxu0 %v1119_v6 }
  0xf0   :  { %975 = vmatpush.msra.mxu2 %v688_v42  ;;  %v1117_v42 = vld [vmem:[%s2689_s5 + $0x58] sm:$0xff]  ;;  %1164 = vmatpush.msrb.mxu1 %v1159_v52 }
  0xf1   :  { %1127 = vmatpush.msrb.mxu0 %v1118_v60 }
  0xf2   :  { %976 = vmatpush.msra.mxu2 %v686_v10  ;;  %v1116_v10 = vld [vmem:[%s2689_s5 + $0x50] sm:$0xff] }
  0xf3   :  { %1128 = vmatpush.msrb.mxu0 %v1117_v42 }
  0xf4   :  { %977 = vmatpush.msra.mxu2 %v684_v17  ;;  %v1115_v17 = vld [vmem:[%s2689_s5 + $0x48] sm:$0xff] }
  0xf5   :  { %1129 = vmatpush.msrb.mxu0 %v1116_v10 }
  0xf6   :  { %978 = vmatpush.msra.mxu2 %v682_v43  ;;  %v1114_v43 = vld [vmem:[%s2689_s5 + $0x40] sm:$0xff] }
  0xf7   :  { %1130 = vmatpush.msrb.mxu0 %v1115_v17 }
  0xf8   :  { %979 = vmatpush.msra.mxu2 %v680_v59  ;;  %v1113_v59 = vld [vmem:[%s2689_s5 + $0x38] sm:$0xff] }
  0xf9   :  { %1131 = vmatpush.msrb.mxu0 %v1114_v43 }
  0xfa   :  { %980 = vmatpush.msra.mxu2 %v678_v44  ;;  %v1112_v44 = vld [vmem:[%s2689_s5 + $0x30] sm:$0xff] }
  0xfb   :  { %1132 = vmatpush.msrb.mxu0 %v1113_v59 }
  0xfc   :  { %981 = vmatpush.msra.mxu2 %v676_v45  ;;  %v1111_v45 = vld [vmem:[%s2689_s5 + $0x28] sm:$0xff] }
  0xfd   :  { %1133 = vmatpush.msrb.mxu0 %v1112_v44 }
  0xfe   :  { %982 = vmatpush.msra.mxu2 %v674_v46  ;;  %v1110_v46 = vld [vmem:[%s2689_s5 + $0x20] sm:$0xff] }
  0xff   :  { %1134 = vmatpush.msrb.mxu0 %v1111_v45 }
 0x100   :  { %983 = vmatpush.msra.mxu2 %v672_v48  ;;  %v1109_v48 = vld [vmem:[%s2689_s5 + $0x18] sm:$0xff] }
 0x101   :  { %1135 = vmatpush.msrb.mxu0 %v1110_v46 }
 0x102   :  { %984 = vmatpush.msra.mxu2 %v670_v49  ;;  %v1108_v49 = vld [vmem:[%s2689_s5 + $0x10] sm:$0xff] }
 0x103   :  { %985 = vmatmul.f32.vlgmr.msra.gmra.mxu2 %v2280_v15  ;;  %v1039_v15 = vld [vmem:[%s2688_s4 + $0x40] sm:$0xff]  ;;  %1136 = vmatpush.msrb.mxu0 %v1109_v48 }
 0x104   :  { %1072 = vmatpush.msra.mxu3 %v1039_v15  ;;  %1085 = vmatpush.msrb.mxu2 %v1062_v58  ;;  %v1158_v15 = vld [vmem:[%s2690_s6 + $0x68] sm:$0xff] }
 0x105   :  { %1137 = vmatpush.msrb.mxu0 %v1108_v49  ;;  %1165 = vmatpush.msrb.mxu1 %v1158_v15  ;;  %v1150_v58 = vld [vmem:[%s2690_s6 + $0x28] sm:$0xff] }
 0x106   :  { %1073 = vmatpush.msra.mxu3 %v1038_v11  ;;  %1086 = vmatpush.msrb.mxu2 %v1061_v2  ;;  %v1157_v11 = vld [vmem:[%s2690_s6 + $0x60] sm:$0xff] }
 0x107   :  { %1138 = vmatpush.msrb.mxu0 %v1107_v62  ;;  %1166 = vmatpush.msrb.mxu1 %v1157_v11  ;;  %v1217_v2 = vld [vmem:[%s2691_s7] ss:$0 sm:$0xff] }
 0x108   :  { %1074 = vmatpush.msra.mxu3 %v1037_v21  ;;  %1087 = vmatpush.msrb.mxu2 %v1060_v3  ;;  %v1156_v21 = vld [vmem:[%s2690_s6 + $0x58] sm:$0xff] }
 0x109   :  { %1139 = vmatpush.msrb.mxu0 %v1106_v50  ;;  %1167 = vmatpush.msrb.mxu1 %v1156_v21  ;;  %v1148_v3 = vld [vmem:[%s2690_s6 + $0x18] sm:$0xff] }
 0x10a   :  { %1075 = vmatpush.msra.mxu3 %v1036_v32  ;;  %1088 = vmatpush.msrb.mxu2 %v1059_v5  ;;  %v1155_v32 = vld [vmem:[%s2690_s6 + $0x50] sm:$0xff] }
 0x10b   :  { %1168 = vmatpush.msrb.mxu1 %v1155_v32 }
 0x10c   :  { %1076 = vmatpush.msra.mxu3 %v1035_v54  ;;  %1089 = vmatpush.msrb.mxu2 %v1058_v7  ;;  %v1154_v54 = vld [vmem:[%s2690_s6 + $0x48] sm:$0xff] }
 0x10d   :  { %1169 = vmatpush.msrb.mxu1 %v1154_v54 }
 0x10e   :  { %1077 = vmatpush.msra.mxu3 %v1034_v47  ;;  %1090 = vmatpush.msrb.mxu2 %v1057_v8  ;;  %v1153_v47 = vld [vmem:[%s2690_s6 + $0x40] sm:$0xff] }
 0x10f   :  { %1170 = vmatpush.msrb.mxu1 %v1153_v47 }
 0x110   :  { %1078 = vmatpush.msra.mxu3 %v1033_v55  ;;  %1091 = vmatpush.msrb.mxu2 %v1056_v12  ;;  %v1152_v55 = vld [vmem:[%s2690_s6 + $0x38] sm:$0xff] }
 0x111   :  { %1171 = vmatpush.msrb.mxu1 %v1152_v55 }
 0x112   :  { %1079 = vmatpush.msra.mxu3 %v1032_v56  ;;  %1092 = vmatpush.msrb.mxu2 %v1055_v13  ;;  %v1151_v56 = vld [vmem:[%s2690_s6 + $0x30] sm:$0xff] }
 0x113   :  { %1172 = vmatpush.msrb.mxu1 %v1151_v56 }
 0x114   :  { %1080 = vmatpush.msra.mxu3 %v1031_v0  ;;  %1093 = vmatpush.msrb.mxu2 %v1054_v16  ;;  %v1149_v0 = vld [vmem:[%s2690_s6 + $0x20] sm:$0xff]  ;;  %v1147_v16 = vld [vmem:[%s2690_s6 + $0x10] sm:$0xff] }
 0x115   :  { %1173 = vmatpush.msrb.mxu1 %v1150_v58 }
 0x116   :  { %1094 = vmatpush.msrb.mxu2 %v1053_v26  ;;  %v1146_v26 = vld [vmem:[%s2690_s6 + $0x8] sm:$0xff] }
 0x117   :  { %1174 = vmatpush.msrb.mxu1 %v1149_v0 }
 0x118   :  { %1095 = vmatpush.msrb.mxu2 %v1052_v20  ;;  %v1218_v20 = vld [vmem:[%s2691_s7 + $0x1] ss:$0 sm:$0xff] }
 0x119   :  { %1175 = vmatpush.msrb.mxu1 %v1148_v3 }
 0x11a   :  { %1096 = vmatpush.msrb.mxu2 %v1051_v19 }
 0x11b   :  { %1176 = vmatpush.msrb.mxu1 %v1147_v16 }
 0x11c   :  { %1097 = vmatpush.msrb.mxu2 %v1050_v25 }
 0x11d   :  { %1177 = vmatpush.msrb.mxu1 %v1146_v26 }
 0x11e   :  { %1098 = vmatpush.msrb.mxu2 %v1049_v29 }
 0x120   :  { %1099 = vmatpush.msrb.mxu2 %v1048_v61 }
 0x122   :  { %1100 = vmatpush.msrb.mxu2 %v1047_v9 }
 0x136   :  { %v926_v57 = vpop.f32.mrf.mxu0 }
 0x14a   :  { %v846_v36 = vpop.f32.mrf.mxu1 }
 0x150   :  { %v886_v18 = vpop.f32.mrf.mxu3 }
 0x152   :  { %v946_v27 = vpop.f32.mrf.mxu1 }
 0x156   :  { %v1006_v37 = vpop.f32.mrf.mxu0 }
 0x158   :  { %v966_v30 = vpop.f32.mrf.mxu3 }
 0x166   :  { %v866_v23 = vpop.f32.mrf.mxu2 }
 0x167   :  { %v867_v24 = vadd.f32 %v866_v23, %v846_v36  ;;  %v1145_v36 = vld [vmem:[%s2690_s6] sm:$0xff]  ;;  %s1192_s6 = sshll.u32 %s2692_s8, 4  ;;  %s1193_s6 = int_to_ptr.hbm [resolvable:$true] %s1192_s6 }
 0x168   :  { %1178 = vmatpush.msrb.mxu1 %v1145_v36 }
 0x169   :  { %v927_v28 = vadd.f32 %v926_v57, %v867_v24  ;;  %v1219_v57 = vld [vmem:[%s2691_s7 + $0x2] ss:$0 sm:$0xff] }
 0x16a   :  { %v1026_v1 = vpop.f32.mrf.mxu1 }
 0x16b   :  { %v947_v53 = vadd.f32 %v946_v27, %v927_v28 }
 0x16d   :  { %v967_v31 = vadd.f32 %v966_v30, %v947_v53 }
 0x16e   :  { %v906_v4 = vpop.f32.mrf.mxu2 }
 0x16f   :  { %v1029_v33 = vmax.f32 %v967_v31, 0.0  ;;  %v907_v34 = vadd.f32 %v906_v4, %v886_v18 }
 0x171   :  { %1081 = vmatmul.f32.vlgmr.msra.gmra.mxu3 %v1029_v33 }
 0x186   :  { %v986_v35 = vpop.f32.mrf.mxu2 }
 0x187   :  { %v987_v38 = vadd.f32 %v986_v35, %v907_v34 }
 0x189   :  { %v1007_v63 = vadd.f32 %v1006_v37, %v987_v38 }
 0x18b   :  { %v1027_v39 = vadd.f32 %v1026_v1, %v1007_v63 }
 0x18d   :  { %v1030_v40 = vmax.f32 %v1027_v39, 0.0 }
 0x18f   :  { %1101 = vmatmul.f32.vlgmr.msrb.gmra.mxu2 %v1030_v40 }
 0x1f4   :  { %v1082_v5 = vpop.f32.mrf.mxu3 }
 0x1f5   :  { %v1083_v7 = vadd.f32 %v1217_v2, %v1082_v5 }
 0x212   :  { %v1102_v8 = vpop.f32.mrf.mxu2 }
 0x213   :  { %v1103_v12 = vadd.f32 %v1102_v8, %v1083_v7 }
 0x215   :  { %v1105_v13 = vmax.f32 %v1103_v12, 0.0 }
 0x217   :  { %1140 = vmatmul.f32.vlgmr.msrb.gmra.mxu0 %v1105_v13 }
 0x294   :  { %v1141_v18 = vpop.f32.mrf.mxu0 }
 0x295   :  { %v1142_v19 = vadd.f32 %v1218_v20, %v1141_v18 }
 0x297   :  { %v1144_v23 = vmax.f32 %v1142_v19, 0.0 }
 0x299   :  { %1179 = vmatmul.f32.vlgmr.msrb.gmra.mxu1 %v1144_v23 }
 0x316   :  { %v1180_v24 = vpop.f32.mrf.mxu1 }
 0x317   :  { %v1181_v25 = vadd.f32 %v1219_v57, %v1180_v24 }
 0x319   :  { %v1183_v27 = vmul.f32 %v1181_v25, %v2197_v14 }
 0x31b   :  { %1184 = vst [vmem:[#allocation2] sm:$0xff] %v1183_v27 }
 0x31c   :  { %1195 = dma.vmem_to_hbm [thread:$0]  %s1191_s24, 128, %s1193_s6, [#allocation3]  }
 0x31d   :  { %1247 = dma.done.wait [#allocation3], 128  }
 0x31e   :  { %1248 = vsyncadd [#allocation3], 4294967168 }
 0x31f   :  { %1200 = vsyncpa [#allocation3], 1 }

</bundles_post_ra>
